<compile_context>
chip_gen: v7x
topology: tpu7x:2x2x1
jax: 0.10.0
libtpu: 0.0.40
codegen_flags: <defaults>
</compile_context>

<pallas_src>
import functools

import numpy as np
import jax
import jax.numpy as jnp
from jax import lax
from jax.experimental import pallas as pl
from jax.experimental.pallas import tpu as pltpu

EPS = 1e-5     # nn.BatchNorm1d default eps
KPAD = 32      # 27 kernel offsets zero-padded to 32 -> contraction dims 256 / 512


# ------------------------------ Pallas kernels ------------------------------
def _conv_stats_kernel(g_ref, w_ref, y_ref, sum_ref, ssq_ref):
    """One fused MXU matmul per row tile + fused BatchNorm statistics.

    [tile, K] @ [K, Cout] (bf16 inputs, f32 accumulation).  The per-tile
    channel sum / sum-of-squares are written as small per-tile partial blocks
    (combined in the wrapper), so the row grid axis stays "parallel" and the
    VPU reduction hides under the MXU slot.
    """
    y = jnp.dot(g_ref[...], w_ref[...], preferred_element_type=jnp.float32)
    y_ref[...] = y
    s = jnp.sum(y, axis=0, keepdims=True)
    q = jnp.sum(y * y, axis=0, keepdims=True)
    # Fill the 8-sublane partial block; the wrapper reads row 0 of each tile.
    sum_ref[...] = jnp.broadcast_to(s, sum_ref.shape)
    ssq_ref[...] = jnp.broadcast_to(q, ssq_ref.shape)


def _bn_add_relu_kernel(y2_ref, y1d_ref, s2_ref, t2_ref, sd_ref, td_ref, o_ref):
    """out = relu(bn2(y2) + bn_d(yd)); yd = columns [P:2P) of the fused
    conv1/downsample output (read in place, no wrapper-side slice copy)."""
    planes = y2_ref.shape[1]
    yd = y1d_ref[...][:, planes:]
    out = y2_ref[...] * s2_ref[...] + t2_ref[...]
    res = yd * sd_ref[...] + td_ref[...]
    # NOTE: output is planes(=16)-lane wide (masked stores); acceptable since
    # this stage is a tiny fraction of total traffic.
    o_ref[...] = jnp.maximum(out + res, 0.0)


# --------------------------- pallas_call wrappers ----------------------------
def _cparams(sem):
    # 32 MiB scoped VMEM: inside v5e/v6e (128 MiB) and v7x (64 MiB) physical
    # VMEM with headroom; double-buffered [tile, 512] bf16 inputs stay < 5 MiB
    # even at tile = 2048.
    return pltpu.CompilerParams(dimension_semantics=sem,
                                vmem_limit_bytes=32 * 1024 * 1024)


def _conv_stats(g, w, tile):
    npad, k = g.shape
    cout = w.shape[1]
    ntiles = npad // tile
    return pl.pallas_call(
        _conv_stats_kernel,
        out_shape=(jax.ShapeDtypeStruct((npad, cout), jnp.float32),
                   jax.ShapeDtypeStruct((ntiles * 8, cout), jnp.float32),
                   jax.ShapeDtypeStruct((ntiles * 8, cout), jnp.float32)),
        grid_spec=pltpu.PrefetchScalarGridSpec(
            num_scalar_prefetch=0,
            grid=(ntiles,),
            in_specs=[pl.BlockSpec((tile, k), lambda i: (i, 0)),
                      pl.BlockSpec((k, cout), lambda i: (0, 0))],
            out_specs=(pl.BlockSpec((tile, cout), lambda i: (i, 0)),
                       pl.BlockSpec((8, cout), lambda i: (i, 0)),
                       pl.BlockSpec((8, cout), lambda i: (i, 0)))),
        compiler_params=_cparams(("parallel",)),
    )(g, w)


def _bn_add_relu(y2, y1d, s2, t2, sd, td, tile):
    npad, planes = y2.shape
    row_p = pl.BlockSpec((tile, planes), lambda i: (i, 0))
    row_2p = pl.BlockSpec((tile, y1d.shape[1]), lambda i: (i, 0))
    vec = pl.BlockSpec((1, planes), lambda i: (0, 0))
    return pl.pallas_call(
        _bn_add_relu_kernel,
        out_shape=jax.ShapeDtypeStruct((npad, planes), jnp.float32),
        grid_spec=pltpu.PrefetchScalarGridSpec(
            num_scalar_prefetch=0,
            grid=(npad // tile,),
            in_specs=[row_p, row_2p, vec, vec, vec, vec],
            out_specs=row_p),
        compiler_params=_cparams(("parallel",)),
    )(y2, y1d, s2, t2, sd, td)


# ------------------------------- forward pass -------------------------------
@functools.partial(jax.jit, static_argnames=("tile",))
def basic_block(feats, nbr_idx, w1, gamma1, beta1, w2, gamma2, beta2,
                wd, gammad, betad, *, tile=1024):
    """Sparse ResNet BasicBlock forward (stride=1).

    feats   : [N, Cin] f32     nbr_idx: [N, 27] int32 (missing -> N)
    w1      : [27, Cin, P]     w2: [27, P, P]    wd: [Cin, P]
    gamma/beta: [1, P] BatchNorm affine params.
    """
    N, cin = feats.shape
    kvol, _, planes = w1.shape
    assert tile % 8 == 0 and kvol <= KPAD
    npad = ((N + tile - 1) // tile) * tile
    center = kvol // 2            # offset (0,0,0) == kernel-map identity

    # Neighbour table at padded row count, padded to KPAD offsets.  Missing /
    # padding neighbours -> index npad, which resolves to the appended
    # guaranteed-zero row of every gather source (so padded rows and missing
    # taps contribute exactly zero, and BN stats over padded rows stay clean).
    nbr = jnp.where(nbr_idx >= N, npad, nbr_idx.astype(jnp.int32))
    nbr_full = jnp.full((npad, KPAD), npad, jnp.int32).at[:N, :kvol].set(nbr)
    nbr_flat = nbr_full.reshape(-1)

    def gather(src):
        # [npad, C] -> lane-dense [npad, KPAD*C] feeding one MXU matmul.
        # TODO(synk): move this gather in-kernel (scalar-prefetched nbr table +
        # VMEM-resident source) once a vectorised row gather lowers in Mosaic.
        zp = jnp.concatenate([src, jnp.zeros((1, src.shape[1]), src.dtype)], 0)
        return jnp.take(zp, nbr_flat, axis=0).reshape(npad, KPAD * src.shape[1])

    # Fused weights.  conv1 + downsample: [KPAD*Cin, 2P]; the 1x1x1 downsample
    # conv lives in the centre-offset rows of the extra P output columns.
    w1p = jnp.zeros((KPAD, cin, planes), jnp.float32).at[:kvol].set(w1)
    wdp = jnp.zeros((KPAD, cin, planes), jnp.float32).at[center].set(wd)
    w1d = jnp.concatenate([w1p, wdp], axis=-1)
    w1d = w1d.reshape(KPAD * cin, 2 * planes).astype(jnp.bfloat16)     # [256, 32]
    w2f = jnp.zeros((KPAD, planes, planes), jnp.float32).at[:kvol].set(w2)
    w2f = w2f.reshape(KPAD * planes, planes).astype(jnp.bfloat16)      # [512, 16]

    def bn_affine(psum, pssq, gamma, beta):
        # Combine per-tile partials (row 0 of each 8-row block); training-mode
        # BatchNorm1d with biased variance over the N real rows.
        s = jnp.sum(psum[::8], axis=0, keepdims=True)
        q = jnp.sum(pssq[::8], axis=0, keepdims=True)
        mean = s / N
        var = q / N - mean * mean
        scale = gamma * lax.rsqrt(var + EPS)
        return scale, beta - mean * scale

    x_pad = jnp.pad(feats, ((0, npad - N), (0, 0))).astype(jnp.bfloat16)

    # Stage 1: fused conv1 + downsample conv (+ BN sum / sum-of-squares).
    y1d, ps1, pq1 = _conv_stats(gather(x_pad), w1d, tile)      # [npad, 2P] f32
    gcat = jnp.concatenate([gamma1, gammad], axis=1)
    bcat = jnp.concatenate([beta1, betad], axis=1)
    sc1, sh1 = bn_affine(ps1, pq1, gcat, bcat)                 # [1, 2P]

    # Stage 2: bn1 + relu (folded by XLA into the conv2 gather chain)
    #          -> conv2 (+ BN stats).
    z1 = jnp.maximum(y1d[:, :planes] * sc1[:, :planes] + sh1[:, :planes], 0.0)
    y2, ps2, pq2 = _conv_stats(gather(z1.astype(jnp.bfloat16)), w2f, tile)
    sc2, sh2 = bn_affine(ps2, pq2, gamma2, beta2)

    # Stage 3: bn2(out) + bn_d(residual) -> relu.
    out = _bn_add_relu(y2, y1d, sc2, sh2, sc1[:, planes:], sh1[:, planes:], tile)
    return out[:N]


# ------------------------------ host-side glue -------------------------------
def build_neighbor_table(coords, kernel_size=3, dilation=1):
    """[N, K] int32 neighbour-index table; missing neighbours map to N."""
    coords = np.asarray(coords)
    N = coords.shape[0]
    lut = {tuple(int(v) for v in c): i for i, c in enumerate(coords)}
    r = kernel_size // 2
    offsets = [(dx, dy, dz)
               for dx in range(-r, r + 1)
               for dy in range(-r, r + 1)
               for dz in range(-r, r + 1)]
    nbr = np.full((N, len(offsets)), N, np.int32)
    for i, (b, x, y, z) in enumerate(coords):
        for k, (dx, dy, dz) in enumerate(offsets):
            j = lut.get((int(b), int(x) + dx * dilation,
                         int(y) + dy * dilation, int(z) + dz * dilation))
            if j is not None:
                nbr[i, k] = j
    return nbr


def reference(feats, nbr, w1, g1, b1, w2, g2, b2, wd, gd, bd):
    """Pure-JAX f32 reference for checking."""
    N = feats.shape[0]

    def bn(y, gamma, beta):
        m = jnp.mean(y, axis=0, keepdims=True)
        v = jnp.mean((y - m) ** 2, axis=0, keepdims=True)
        return (y - m) * lax.rsqrt(v + EPS) * gamma + beta

    def conv(feat, w):
        zp = jnp.concatenate([feat, jnp.zeros((1, feat.shape[1]), feat.dtype)], 0)
        g = jnp.take(zp, nbr.reshape(-1), axis=0).reshape(N, nbr.shape[1],
                                                          feat.shape[1])
        return jnp.einsum("nkc,kcd->nd", g, w)

    out = jnp.maximum(bn(conv(feats, w1), g1, b1), 0.0)
    out = bn(conv(out, w2), g2, b2)
    res = bn(feats @ wd, gd, bd)
    return jnp.maximum(out + res, 0.0)


if __name__ == "__main__":
    inplanes, planes, dilation = 8, 16, 1

    # Sparse coords: checkerboard subsets of two differently sized voxel grids
    # (N = 256 + 108 = 364, deliberately NOT a multiple of the row tile so the
    # zero-row padding + multi-tile stats paths are exercised).
    coords = [(0, x, y, z) for x in range(8) for y in range(8) for z in range(8)
              if (x + y + z) % 2 == 0]
    coords += [(1, x, y, z) for x in range(6) for y in range(6) for z in range(6)
               if (x + y + z) % 2 == 0]
    coords = np.array(coords, np.int32)
    N = coords.shape[0]
    nbr = build_neighbor_table(coords, kernel_size=3, dilation=dilation)

    key = jax.random.PRNGKey(0)
    kx, k1, k2, kd = jax.random.split(key, 4)

    def bf16_round(a):  # keep params bf16-representable so the f32 ref is fair
        return a.astype(jnp.bfloat16).astype(jnp.float32)

    feats = bf16_round(jax.random.normal(kx, (N, inplanes), jnp.float32))
    # MinkowskiConvolution weights: [kernel_volume, C_in, C_out], bias=False
    w1 = bf16_round(0.1 * jax.random.normal(k1, (27, inplanes, planes), jnp.float32))
    w2 = bf16_round(0.1 * jax.random.normal(k2, (27, planes, planes), jnp.float32))
    wd = bf16_round(0.1 * jax.random.normal(kd, (inplanes, planes), jnp.float32))
    # MinkowskiBatchNorm default init: gamma=1, beta=0 (shape [1, C])
    g1 = jnp.ones((1, planes), jnp.float32); b1 = jnp.zeros((1, planes), jnp.float32)
    g2 = jnp.ones((1, planes), jnp.float32); b2 = jnp.zeros((1, planes), jnp.float32)
    gd = jnp.ones((1, planes), jnp.float32); bd = jnp.zeros((1, planes), jnp.float32)

    out = basic_block(feats, jnp.asarray(nbr), w1, g1, b1, w2, g2, b2,
                      wd, gd, bd, tile=128)
    out = jax.block_until_ready(out)

    ref = reference(feats, jnp.asarray(nbr), w1, g1, b1, w2, g2, b2, wd, gd, bd)
    assert out.shape == (N, planes)
    # Tolerance covers bf16 storage of the conv inputs / gathered activations
    # against the pure-f32 reference (params are exactly bf16-representable).
    np.testing.assert_allclose(np.asarray(out), np.asarray(ref),
                               rtol=5e-2, atol=5e-2)
    print("KERNEL_OK")
</pallas_src>

<mosaic_0001>
module attributes {stable_mosaic.version = 11 : i64} {
  func.func @_conv_stats_kernel(%arg0: i32, %arg1: memref<128x256xbf16, #tpu.memory_space<vmem>>, %arg2: memref<256x32xbf16, #tpu.memory_space<vmem>>, %arg3: memref<128x32xf32, #tpu.memory_space<vmem>>, %arg4: memref<8x32xf32, #tpu.memory_space<vmem>>, %arg5: memref<8x32xf32, #tpu.memory_space<vmem>>) attributes {dimension_semantics = [#tpu.dimension_semantics<parallel>], iteration_bounds = array<i64: 3>, scalar_prefetch = 0 : i64, scratch_operands = 0 : i64, tpu.core_type = #tpu.core_type<tc>, window_params = [{transform_indices = @transform_0, window_bounds = array<i64: 128, 256>}, {pipeline_mode = #tpu.pipeline_mode<synchronous>, transform_indices = @transform_1, window_bounds = array<i64: 256, 32>}, {transform_indices = @transform_2, window_bounds = array<i64: 128, 32>}, {transform_indices = @transform_3, window_bounds = array<i64: 8, 32>}, {transform_indices = @transform_4, window_bounds = array<i64: 8, 32>}]} {
    %c0 = arith.constant 0 : index
    %c0_0 = arith.constant 0 : index
    %0 = vector.load %arg1[%c0, %c0_0] : memref<128x256xbf16, #tpu.memory_space<vmem>>, vector<128x256xbf16>
    %c0_1 = arith.constant 0 : index
    %c0_2 = arith.constant 0 : index
    %1 = vector.load %arg2[%c0_1, %c0_2] : memref<256x32xbf16, #tpu.memory_space<vmem>>, vector<256x32xbf16>
    %cst = arith.constant dense<0.000000e+00> : vector<128x32xf32>
    %2 = tpu.matmul %0, %1, %cst {dimension_numbers = #tpu.dot_dimension_numbers<[1], [0], [0], [1], [0, 0, 1, 1], [], []>} : vector<128x256xbf16>, vector<256x32xbf16>, vector<128x32xf32> -> vector<128x32xf32>
    %c0_3 = arith.constant 0 : index
    %c0_4 = arith.constant 0 : index
    %3 = vector.load %arg3[%c0_3, %c0_4] : memref<128x32xf32, #tpu.memory_space<vmem>>, vector<128x32xf32>
    tpu.vector_store %arg3[%c0_3, %c0_4], %2 {strides = array<i32>} : memref<128x32xf32, #tpu.memory_space<vmem>>, vector<128x32xf32>,
    %cst_5 = arith.constant dense<0.000000e+00> : vector<32xf32>
    %4 = vector.multi_reduction <add>, %2, %cst_5 [0] : vector<128x32xf32> to vector<32xf32>
    %5 = vector.shape_cast %4 : vector<32xf32> to vector<1x32xf32>
    %6 = arith.mulf %2, %2 : vector<128x32xf32>
    %cst_6 = arith.constant dense<0.000000e+00> : vector<32xf32>
    %7 = vector.multi_reduction <add>, %6, %cst_6 [0] : vector<128x32xf32> to vector<32xf32>
    %8 = vector.shape_cast %7 : vector<32xf32> to vector<1x32xf32>
    %9 = vector.shape_cast %5 : vector<1x32xf32> to vector<1x32xf32>
    %10 = vector.broadcast %9 : vector<1x32xf32> to vector<8x32xf32>
    %c0_7 = arith.constant 0 : index
    %c0_8 = arith.constant 0 : index
    %11 = vector.load %arg4[%c0_7, %c0_8] : memref<8x32xf32, #tpu.memory_space<vmem>>, vector<8x32xf32>
    tpu.vector_store %arg4[%c0_7, %c0_8], %10 {strides = array<i32>} : memref<8x32xf32, #tpu.memory_space<vmem>>, vector<8x32xf32>,
    %12 = vector.shape_cast %8 : vector<1x32xf32> to vector<1x32xf32>
    %13 = vector.broadcast %12 : vector<1x32xf32> to vector<8x32xf32>
    %c0_9 = arith.constant 0 : index
    %c0_10 = arith.constant 0 : index
    %14 = vector.load %arg5[%c0_9, %c0_10] : memref<8x32xf32, #tpu.memory_space<vmem>>, vector<8x32xf32>
    tpu.vector_store %arg5[%c0_9, %c0_10], %13 {strides = array<i32>} : memref<8x32xf32, #tpu.memory_space<vmem>>, vector<8x32xf32>,
    return
  }
  func.func @transform_0(%arg0: i32) -> (i32, i32) {
    %c0_i32 = arith.constant 0 : i32
    %c0_i32_0 = arith.constant 0 : i32
    return %arg0, %c0_i32 : i32, i32
  }
  func.func @transform_1(%arg0: i32) -> (i32, i32) {
    %c0_i32 = arith.constant 0 : i32
    %c0_i32_0 = arith.constant 0 : i32
    %c0_i32_1 = arith.constant 0 : i32
    return %c0_i32, %c0_i32_0 : i32, i32
  }
  func.func @transform_2(%arg0: i32) -> (i32, i32) {
    %c0_i32 = arith.constant 0 : i32
    %c0_i32_0 = arith.constant 0 : i32
    return %arg0, %c0_i32 : i32, i32
  }
  func.func @transform_3(%arg0: i32) -> (i32, i32) {
    %c0_i32 = arith.constant 0 : i32
    %c0_i32_0 = arith.constant 0 : i32
    return %arg0, %c0_i32 : i32, i32
  }
  func.func @transform_4(%arg0: i32) -> (i32, i32) {
    %c0_i32 = arith.constant 0 : i32
    %c0_i32_0 = arith.constant 0 : i32
    return %arg0, %c0_i32 : i32, i32
  }
}

module attributes {stable_mosaic.version = 11 : i64} {
  func.func @_conv_stats_kernel(%arg0: i32, %arg1: memref<128x512xbf16, #tpu.memory_space<vmem>>, %arg2: memref<512x16xbf16, #tpu.memory_space<vmem>>, %arg3: memref<128x16xf32, #tpu.memory_space<vmem>>, %arg4: memref<8x16xf32, #tpu.memory_space<vmem>>, %arg5: memref<8x16xf32, #tpu.memory_space<vmem>>) attributes {dimension_semantics = [#tpu.dimension_semantics<parallel>], iteration_bounds = array<i64: 3>, scalar_prefetch = 0 : i64, scratch_operands = 0 : i64, tpu.core_type = #tpu.core_type<tc>, window_params = [{transform_indices = @transform_0, window_bounds = array<i64: 128, 512>}, {pipeline_mode = #tpu.pipeline_mode<synchronous>, transform_indices = @transform_1, window_bounds = array<i64: 512, 16>}, {transform_indices = @transform_2, window_bounds = array<i64: 128, 16>}, {transform_indices = @transform_3, window_bounds = array<i64: 8, 16>}, {transform_indices = @transform_4, window_bounds = array<i64: 8, 16>}]} {
    %c0 = arith.constant 0 : index
    %c0_0 = arith.constant 0 : index
    %0 = vector.load %arg1[%c0, %c0_0] : memref<128x512xbf16, #tpu.memory_space<vmem>>, vector<128x512xbf16>
    %c0_1 = arith.constant 0 : index
    %c0_2 = arith.constant 0 : index
    %1 = vector.load %arg2[%c0_1, %c0_2] : memref<512x16xbf16, #tpu.memory_space<vmem>>, vector<512x16xbf16>
    %cst = arith.constant dense<0.000000e+00> : vector<128x16xf32>
    %2 = tpu.matmul %0, %1, %cst {dimension_numbers = #tpu.dot_dimension_numbers<[1], [0], [0], [1], [0, 0, 1, 1], [], []>} : vector<128x512xbf16>, vector<512x16xbf16>, vector<128x16xf32> -> vector<128x16xf32>
    %c0_3 = arith.constant 0 : index
    %c0_4 = arith.constant 0 : index
    %3 = vector.load %arg3[%c0_3, %c0_4] : memref<128x16xf32, #tpu.memory_space<vmem>>, vector<128x16xf32>
    tpu.vector_store %arg3[%c0_3, %c0_4], %2 {strides = array<i32>} : memref<128x16xf32, #tpu.memory_space<vmem>>, vector<128x16xf32>,
    %cst_5 = arith.constant dense<0.000000e+00> : vector<16xf32>
    %4 = vector.multi_reduction <add>, %2, %cst_5 [0] : vector<128x16xf32> to vector<16xf32>
    %5 = vector.shape_cast %4 : vector<16xf32> to vector<1x16xf32>
    %6 = arith.mulf %2, %2 : vector<128x16xf32>
    %cst_6 = arith.constant dense<0.000000e+00> : vector<16xf32>
    %7 = vector.multi_reduction <add>, %6, %cst_6 [0] : vector<128x16xf32> to vector<16xf32>
    %8 = vector.shape_cast %7 : vector<16xf32> to vector<1x16xf32>
    %9 = vector.shape_cast %5 : vector<1x16xf32> to vector<1x16xf32>
    %10 = vector.broadcast %9 : vector<1x16xf32> to vector<8x16xf32>
    %c0_7 = arith.constant 0 : index
    %c0_8 = arith.constant 0 : index
    %11 = vector.load %arg4[%c0_7, %c0_8] : memref<8x16xf32, #tpu.memory_space<vmem>>, vector<8x16xf32>
    tpu.vector_store %arg4[%c0_7, %c0_8], %10 {strides = array<i32>} : memref<8x16xf32, #tpu.memory_space<vmem>>, vector<8x16xf32>,
    %12 = vector.shape_cast %8 : vector<1x16xf32> to vector<1x16xf32>
    %13 = vector.broadcast %12 : vector<1x16xf32> to vector<8x16xf32>
    %c0_9 = arith.constant 0 : index
    %c0_10 = arith.constant 0 : index
    %14 = vector.load %arg5[%c0_9, %c0_10] : memref<8x16xf32, #tpu.memory_space<vmem>>, vector<8x16xf32>
    tpu.vector_store %arg5[%c0_9, %c0_10], %13 {strides = array<i32>} : memref<8x16xf32, #tpu.memory_space<vmem>>, vector<8x16xf32>,
    return
  }
  func.func @transform_0(%arg0: i32) -> (i32, i32) {
    %c0_i32 = arith.constant 0 : i32
    %c0_i32_0 = arith.constant 0 : i32
    return %arg0, %c0_i32 : i32, i32
  }
  func.func @transform_1(%arg0: i32) -> (i32, i32) {
    %c0_i32 = arith.constant 0 : i32
    %c0_i32_0 = arith.constant 0 : i32
    %c0_i32_1 = arith.constant 0 : i32
    return %c0_i32, %c0_i32_0 : i32, i32
  }
  func.func @transform_2(%arg0: i32) -> (i32, i32) {
    %c0_i32 = arith.constant 0 : i32
    %c0_i32_0 = arith.constant 0 : i32
    return %arg0, %c0_i32 : i32, i32
  }
  func.func @transform_3(%arg0: i32) -> (i32, i32) {
    %c0_i32 = arith.constant 0 : i32
    %c0_i32_0 = arith.constant 0 : i32
    return %arg0, %c0_i32 : i32, i32
  }
  func.func @transform_4(%arg0: i32) -> (i32, i32) {
    %c0_i32 = arith.constant 0 : i32
    %c0_i32_0 = arith.constant 0 : i32
    return %arg0, %c0_i32 : i32, i32
  }
}

module attributes {stable_mosaic.version = 11 : i64} {
  func.func @_bn_add_relu_kernel(%arg0: i32, %arg1: memref<128x16xf32, #tpu.memory_space<vmem>>, %arg2: memref<128x32xf32, #tpu.memory_space<vmem>>, %arg3: memref<1x16xf32, #tpu.memory_space<vmem>>, %arg4: memref<1x16xf32, #tpu.memory_space<vmem>>, %arg5: memref<1x16xf32, #tpu.memory_space<vmem>>, %arg6: memref<1x16xf32, #tpu.memory_space<vmem>>, %arg7: memref<128x16xf32, #tpu.memory_space<vmem>>) attributes {dimension_semantics = [#tpu.dimension_semantics<parallel>], iteration_bounds = array<i64: 3>, scalar_prefetch = 0 : i64, scratch_operands = 0 : i64, tpu.core_type = #tpu.core_type<tc>, window_params = [{transform_indices = @transform_0, window_bounds = array<i64: 128, 16>}, {transform_indices = @transform_1, window_bounds = array<i64: 128, 32>}, {pipeline_mode = #tpu.pipeline_mode<synchronous>, transform_indices = @transform_2, window_bounds = array<i64: 1, 16>}, {pipeline_mode = #tpu.pipeline_mode<synchronous>, transform_indices = @transform_3, window_bounds = array<i64: 1, 16>}, {pipeline_mode = #tpu.pipeline_mode<synchronous>, transform_indices = @transform_4, window_bounds = array<i64: 1, 16>}, {pipeline_mode = #tpu.pipeline_mode<synchronous>, transform_indices = @transform_5, window_bounds = array<i64: 1, 16>}, {transform_indices = @transform_6, window_bounds = array<i64: 128, 16>}]} {
    %c0 = arith.constant 0 : index
    %c0_0 = arith.constant 0 : index
    %0 = vector.load %arg2[%c0, %c0_0] : memref<128x32xf32, #tpu.memory_space<vmem>>, vector<128x32xf32>
    %1 = vector.extract_strided_slice %0 {offsets = [0, 16], sizes = [128, 16], strides = [1, 1]} : vector<128x32xf32> to vector<128x16xf32>
    %c0_1 = arith.constant 0 : index
    %c0_2 = arith.constant 0 : index
    %2 = vector.load %arg1[%c0_1, %c0_2] : memref<128x16xf32, #tpu.memory_space<vmem>>, vector<128x16xf32>
    %c0_3 = arith.constant 0 : index
    %c0_4 = arith.constant 0 : index
    %3 = vector.load %arg3[%c0_3, %c0_4] : memref<1x16xf32, #tpu.memory_space<vmem>>, vector<1x16xf32>
    %4 = vector.broadcast %3 : vector<1x16xf32> to vector<128x16xf32>
    %5 = arith.mulf %2, %4 : vector<128x16xf32>
    %c0_5 = arith.constant 0 : index
    %c0_6 = arith.constant 0 : index
    %6 = vector.load %arg4[%c0_5, %c0_6] : memref<1x16xf32, #tpu.memory_space<vmem>>, vector<1x16xf32>
    %7 = vector.broadcast %6 : vector<1x16xf32> to vector<128x16xf32>
    %8 = arith.addf %5, %7 : vector<128x16xf32>
    %c0_7 = arith.constant 0 : index
    %c0_8 = arith.constant 0 : index
    %9 = vector.load %arg5[%c0_7, %c0_8] : memref<1x16xf32, #tpu.memory_space<vmem>>, vector<1x16xf32>
    %10 = vector.broadcast %9 : vector<1x16xf32> to vector<128x16xf32>
    %11 = arith.mulf %1, %10 : vector<128x16xf32>
    %c0_9 = arith.constant 0 : index
    %c0_10 = arith.constant 0 : index
    %12 = vector.load %arg6[%c0_9, %c0_10] : memref<1x16xf32, #tpu.memory_space<vmem>>, vector<1x16xf32>
    %13 = vector.broadcast %12 : vector<1x16xf32> to vector<128x16xf32>
    %14 = arith.addf %11, %13 : vector<128x16xf32>
    %15 = arith.addf %8, %14 : vector<128x16xf32>
    %cst = arith.constant 0.000000e+00 : f32
    %16 = vector.broadcast %cst : f32 to vector<128x16xf32>
    %17 = arith.maximumf %15, %16 : vector<128x16xf32>
    %c0_11 = arith.constant 0 : index
    %c0_12 = arith.constant 0 : index
    %18 = vector.load %arg7[%c0_11, %c0_12] : memref<128x16xf32, #tpu.memory_space<vmem>>, vector<128x16xf32>
    tpu.vector_store %arg7[%c0_11, %c0_12], %17 {strides = array<i32>} : memref<128x16xf32, #tpu.memory_space<vmem>>, vector<128x16xf32>,
    return
  }
  func.func @transform_0(%arg0: i32) -> (i32, i32) {
    %c0_i32 = arith.constant 0 : i32
    %c0_i32_0 = arith.constant 0 : i32
    return %arg0, %c0_i32 : i32, i32
  }
  func.func @transform_1(%arg0: i32) -> (i32, i32) {
    %c0_i32 = arith.constant 0 : i32
    %c0_i32_0 = arith.constant 0 : i32
    return %arg0, %c0_i32 : i32, i32
  }
  func.func @transform_2(%arg0: i32) -> (i32, i32) {
    %c0_i32 = arith.constant 0 : i32
    %c0_i32_0 = arith.constant 0 : i32
    %c0_i32_1 = arith.constant 0 : i32
    return %c0_i32, %c0_i32_0 : i32, i32
  }
  func.func @transform_3(%arg0: i32) -> (i32, i32) {
    %c0_i32 = arith.constant 0 : i32
    %c0_i32_0 = arith.constant 0 : i32
    %c0_i32_1 = arith.constant 0 : i32
    return %c0_i32, %c0_i32_0 : i32, i32
  }
  func.func @transform_4(%arg0: i32) -> (i32, i32) {
    %c0_i32 = arith.constant 0 : i32
    %c0_i32_0 = arith.constant 0 : i32
    %c0_i32_1 = arith.constant 0 : i32
    return %c0_i32, %c0_i32_0 : i32, i32
  }
  func.func @transform_5(%arg0: i32) -> (i32, i32) {
    %c0_i32 = arith.constant 0 : i32
    %c0_i32_0 = arith.constant 0 : i32
    %c0_i32_1 = arith.constant 0 : i32
    return %c0_i32, %c0_i32_0 : i32, i32
  }
  func.func @transform_6(%arg0: i32) -> (i32, i32) {
    %c0_i32 = arith.constant 0 : i32
    %c0_i32_0 = arith.constant 0 : i32
    return %arg0, %c0_i32 : i32, i32
  }
}

</mosaic_0001>

<bundles_post_ra>
// kernel: basic_block.3
= control target key start
LH: loop header
LB: loop body
LE: loop exit
PB: predicated region body
PF: predicated region fallthrough
CT: control target
= control target key end

     0   :  { %s982_s15 = smov 0   ;;  %s1181_s0 = inlined_call_operand.vmem [shape: bf16[384,256], index: 0, kind: input, shape index: {}]   ;;  %s1182_s1 = inlined_call_operand.vmem [shape: bf16[256,32], index: 1, kind: input, shape index: {}]   ;;  %s1183_s2 = inlined_call_operand.vmem [shape: f32[384,32], index: 2, kind: output, shape index: {0}]   ;;  %s1184_s3 = inlined_call_operand.vmem [shape: f32[24,32], index: 3, kind: output, shape index: {1}]   ;;  %s1185_s4 = inlined_call_operand.vmem [shape: f32[24,32], index: 4, kind: output, shape index: {2}]  }
   0x1 LB: > { %s988_s16 = sadd.s32 4294967295, %s955_s15   ;;  %p778_p0 = scmp.ge.s32.totalorder %s955_s15, 1  ;;  %s955_s15 = sphi %s982_s15, %s15_s15  }
   0x2   : > { %p169_p1 = scmp.lt.s32.totalorder %s955_s15, 4 }
   0x4   : > { %p170_p2 = pnand %p778_p0, %p169_p1 }
   0x5   : > { %v909_v0 = vld [vmem:[%s1182_s1 + $0x40] sm:$0xff] (!%p170_p2)   ;;  %s779_s19 = sshll.u32 (!%p170_p2), %s988_s16, 4  ;;  %v911_v2 = vld [vmem:[%s1182_s1 + $0x48] sm:$0xff] (!%p170_p2)   ;;  %v913_v4 = vld [vmem:[%s1182_s1 + $0x50] sm:$0xff] (!%p170_p2)   ;;  %vm547_vm0 = vcmask (!%p170_p2), 261120   ;;  %p217_p4 = scmp.lt.s32.totalorder (!%p170_p2), %s988_s16, 2 }
   0x6   : > { %173 = sbr.rel (%p170_p2) target bundleno = 313 (0x139), region = 28  ;;  %v910_v1 = vld [vmem:[%s1182_s1] sm:$0xff] (!%p170_p2)   ;;  %821 = vmatprep.subr.bf16.mxu0 (!%p170_p2), %v909_v0  ;;  %885 = vmatprep.subr.bf16.mxu1 (!%p170_p2), %v909_v0  ;;  %v912_v3 = vld [vmem:[%s1182_s1 + $0x8] sm:$0xff] (!%p170_p2)   ;;  %p205_p3 = scmp.lt.s32.totalorder (!%p170_p2), %s779_s19, 47  ;;  %v914_v5 = vld [vmem:[%s1182_s1 + $0x10] sm:$0xff] (!%p170_p2)  }
   0x7   : > { %822 = vmatpush3.bf16.msra.mxu0 (!%p170_p2), %v910_v1  ;;  %893 = vmatpush3.bf16.msra.mxu1 (!%p170_p2), %v910_v1  ;;  %v915_v6 = vld [vmem:[%s1182_s1 + $0x58] sm:$0xff] (!%p170_p2)   ;;  %v917_v8 = vld [vmem:[%s1182_s1 + $0x60] sm:$0xff] (!%p170_p2)   ;;  %v919_v10 = vld [vmem:[%s1182_s1 + $0x68] sm:$0xff] (!%p170_p2)  }
   0x8   : > { %823 = vmatprep.subr.bf16.mxu0 (!%p170_p2), %v911_v2  ;;  %886 = vmatprep.subr.bf16.mxu1 (!%p170_p2), %v911_v2  ;;  %v916_v7 = vld [vmem:[%s1182_s1 + $0x18] sm:$0xff] (!%p170_p2)   ;;  %v918_v9 = vld [vmem:[%s1182_s1 + $0x20] sm:$0xff] (!%p170_p2)   ;;  %v920_v12 = vld [vmem:[%s1182_s1 + $0x28] sm:$0xff] (!%p170_p2)  }
   0x9   : > { %v921_v14 = vld [vmem:[%s1182_s1 + $0x70] sm:$0xff] (!%p170_p2)   ;;  %v923_v16 = vld [vmem:[%s1182_s1 + $0x78] sm:$0xff] (!%p170_p2)  }
   0xa   : > { %v922_v15 = vld [vmem:[%s1182_s1 + $0x30] sm:$0xff] (!%p170_p2)   ;;  %v924_v17 = vld [vmem:[%s1182_s1 + $0x38] sm:$0xff] (!%p170_p2)  }
   0xb   : > { %824 = vmatpush3.bf16.msra.mxu0 (!%p170_p2), %v912_v3  ;;  %894 = vmatpush3.bf16.msra.mxu1 (!%p170_p2), %v912_v3 }
   0xc   : > { %825 = vmatprep.subr.bf16.mxu0 (!%p170_p2), %v913_v4  ;;  %887 = vmatprep.subr.bf16.mxu1 (!%p170_p2), %v913_v4 }
   0xd   : > { %s1187_s19 = smov (!%p205_p3, %s779_s19), 47  ;;  %s1189_s16 = smov (!%p217_p4, %s988_s16), 2 }
   0xe   : > { %s820_s8 = sshll.u32 %s1187_s19, 3  ;;  %s784_s19 = sshll.u32 %s1189_s16, 3 }
   0xf   : > { %826 = vmatpush3.bf16.msra.mxu0 %v914_v5  ;;  %895 = vmatpush3.bf16.msra.mxu1 %v914_v5  ;;  %s1028_s13 = scalar_lea.vmem %s1181_s0, %s820_s8  ;;  %s1072_s7 = scalar_lea.vmem %s1183_s2, %s820_s8 }
  0x10   : > { %827 = vmatprep.subr.bf16.mxu0 %v915_v6  ;;  %888 = vmatprep.subr.bf16.mxu1 %v915_v6  ;;  %v927_v11 = vld [vmem:[%s1028_s13 + $0x4] ss:$8 sps:$4 sm:$0xff]   ;;  %v925_v18 = vld [vmem:[%s1028_s13] ss:$8 sps:$4 sm:$0xff]   ;;  %v928_v20 = vld [vmem:[%s1028_s13 + $0x14] ss:$8 sps:$4 sm:$0xff]   ;;  %s220_s10 = scalar_lea.vmem %s1184_s3, %s784_s19 }
  0x11   : > { %v933_v13 = vld [vmem:[%s1028_s13 + $0x44] ss:$8 sps:$4 sm:$0xff]   ;;  %482 = vmatprep.mubr.bf16.mxu0 %v927_v11  ;;  %v931_v19 = vld [vmem:[%s1028_s13 + $0x40] ss:$8 sps:$4 sm:$0xff]   ;;  %v937_v21 = vld [vmem:[%s1028_s13 + $0x54] ss:$8 sps:$4 sm:$0xff]  }
  0x12   : > { %514 = vmatprep.mubr.bf16.mxu1 %v933_v13  ;;  %v930_v22 = vld [vmem:[%s1028_s13 + $0x10] ss:$8 sps:$4 sm:$0xff]   ;;  %v934_v24 = vld [vmem:[%s1028_s13 + $0x24] ss:$8 sps:$4 sm:$0xff]   ;;  %v936_v26 = vld [vmem:[%s1028_s13 + $0x20] ss:$8 sps:$4 sm:$0xff]  }
  0x13   : > { %828 = vmatpush3.bf16.msra.mxu0 %v916_v7  ;;  %896 = vmatpush3.bf16.msra.mxu1 %v916_v7  ;;  %v939_v23 = vld [vmem:[%s1028_s13 + $0x50] ss:$8 sps:$4 sm:$0xff]   ;;  %v943_v25 = vld [vmem:[%s1028_s13 + $0x64] ss:$8 sps:$4 sm:$0xff]   ;;  %v945_v27 = vld [vmem:[%s1028_s13 + $0x60] ss:$8 sps:$4 sm:$0xff]  }
  0x14   : > { %829 = vmatprep.subr.bf16.mxu0 %v917_v8  ;;  %889 = vmatprep.subr.bf16.mxu1 %v917_v8  ;;  %v940_v28 = vld [vmem:[%s1028_s13 + $0x34] ss:$8 sps:$4 sm:$0xff]   ;;  %v942_v30 = vld [vmem:[%s1028_s13 + $0x30] ss:$8 sps:$4 sm:$0xff]  }
  0x15   : > { %v946_v29 = vld [vmem:[%s1028_s13 + $0x74] ss:$8 sps:$4 sm:$0xff]   ;;  %v948_v31 = vld [vmem:[%s1028_s13 + $0x70] ss:$8 sps:$4 sm:$0xff]   ;;  %s224_s13 = scalar_lea.vmem %s1185_s4, %s784_s19 }
  0x17   : > { %830 = vmatpush3.bf16.msra.mxu0 %v918_v9  ;;  %897 = vmatpush3.bf16.msra.mxu1 %v918_v9 }
  0x18   : > { %831 = vmatprep.subr.bf16.mxu0 %v919_v10  ;;  %890 = vmatprep.subr.bf16.mxu1 %v919_v10 }
  0x1b   : > { %832 = vmatpush3.bf16.msra.mxu0 %v920_v12  ;;  %898 = vmatpush3.bf16.msra.mxu1 %v920_v12 }
  0x1c   : > { %833 = vmatprep.subr.bf16.mxu0 %v921_v14  ;;  %891 = vmatprep.subr.bf16.mxu1 %v921_v14 }
  0x1f   : > { %834 = vmatpush3.bf16.msra.mxu0 %v922_v15  ;;  %899 = vmatpush3.bf16.msra.mxu1 %v922_v15 }
  0x20   : > { %835 = vmatprep.subr.bf16.mxu0 %v923_v16  ;;  %892 = vmatprep.subr.bf16.mxu1 %v923_v16 }
  0x23   : > { %836 = vmatpush3.bf16.msra.mxu0 %v924_v17  ;;  %900 = vmatpush3.bf16.msra.mxu1 %v924_v17 }
  0x26   : > { %483 = vmatmul.mubr.bf16.vlgmr.msra.gmra.mrb[0].mxu0 %v925_v18  ;;  %515 = vmatmul.mubr.bf16.vlgmr.msra.gmra.mrb[0].mxu1 %v931_v19 }
  0x27   : > { %490 = vmatprep.mubr.bf16.mxu0 %v928_v20  ;;  %522 = vmatprep.mubr.bf16.mxu1 %v937_v21 }
  0x2e   : > { %491 = vmatmul.mubr.bf16.gmra.mrb[4].mxu0 %v930_v22  ;;  %523 = vmatmul.mubr.bf16.gmra.mrb[4].mxu1 %v939_v23 }
  0x2f   : > { %498 = vmatprep.mubr.bf16.mxu0 %v934_v24  ;;  %530 = vmatprep.mubr.bf16.mxu1 %v943_v25 }
  0x36   : > { %499 = vmatmul.mubr.bf16.gmra.mrb[8].mxu0 %v936_v26  ;;  %531 = vmatmul.mubr.bf16.gmra.mrb[8].mxu1 %v945_v27 }
  0x37   : > { %506 = vmatprep.mubr.bf16.mxu0 %v940_v28  ;;  %538 = vmatprep.mubr.bf16.mxu1 %v946_v29 }
  0x3e   : > { %507 = vmatmul.mubr.bf16.gmra.mrb[12].mxu0 %v942_v30  ;;  %539 = vmatmul.mubr.bf16.gmra.mrb[12].mxu1 %v948_v31 }
  0xf9   : > { %v837_v32 = vpop.f32.mrb[0].mxu0  ;;  %v861_v33 = vpop.f32.mrb[0].mxu1 }
  0xfa   : > { %v838_v34 = vpop.f32.mrb[1].mxu0  ;;  %v862_v35 = vpop.f32.mrb[1].mxu1 }
  0xfb   : > { %v839_v36 = vadd.f32 %v838_v34, %v837_v32  ;;  %v840_v37 = vpop.f32.mrb[2].mxu0  ;;  %v1074_v38 = vadd.f32 %v862_v35, %v861_v33  ;;  %v864_v39 = vpop.f32.mrb[2].mxu1 }
  0xfc   : > { %v841_v40 = vpop.f32.mrb[3].mxu0  ;;  %v865_v41 = vpop.f32.mrb[3].mxu1 }
  0xfd   : > { %548 = vst.msk [vmem:[%s1072_s7] sm:$0xff] %vm547_vm0, %v839_v36  ;;  %v601_v42 = vmul.f32 %v839_v36, %v839_v36  ;;  %v842_v43 = vadd.f32 %v841_v40, %v840_v37  ;;  %556 = vst.msk [vmem:[%s1072_s7 + $0x40] sm:$0xff] %vm547_vm0, %v1074_v38  ;;  %v1081_v44 = vadd.f32 %v865_v41, %v864_v39  ;;  %v564_v45 = vsel %vm547_vm0, %v839_v36, 0.0 }
  0xff   : > { %549 = vst.msk [vmem:[%s1072_s7 + $0x8] sm:$0xff] %vm547_vm0, %v842_v43  ;;  %v565_v46 = vsel %vm547_vm0, %v842_v43, 0.0  ;;  %v602_v47 = vmul.f32 %v842_v43, %v842_v43  ;;  %557 = vst.msk [vmem:[%s1072_s7 + $0x48] sm:$0xff] %vm547_vm0, %v1081_v44  ;;  %v617_v49 = vsel %vm547_vm0, %v601_v42, 0.0 }
 0x100   : > { %v566_v48 = vadd.f32 %v565_v46, %v564_v45 }
 0x101   : > { %v618_v50 = vsel %vm547_vm0, %v602_v47, 0.0  ;;  %v843_v51 = vpop.f32.mrb[4].mxu0  ;;  %v867_v52 = vpop.f32.mrb[4].mxu1 }
 0x102   : > { %v619_v53 = vadd.f32 %v618_v50, %v617_v49  ;;  %v844_v54 = vpop.f32.mrb[5].mxu0  ;;  %v868_v55 = vpop.f32.mrb[5].mxu1  ;;  %v609_v49 = vmul.f32 %v1074_v38, %v1074_v38 }
 0x103   : > { %v845_v56 = vadd.f32 %v844_v54, %v843_v51  ;;  %v846_v57 = vpop.f32.mrb[6].mxu0  ;;  %v1092_v58 = vadd.f32 %v868_v55, %v867_v52  ;;  %v870_v59 = vpop.f32.mrb[6].mxu1  ;;  %v579_v55 = vsel %vm547_vm0, %v1074_v38, 0.0 }
 0x104   : > { %v847_v60 = vpop.f32.mrb[7].mxu0  ;;  %v871_v61 = vpop.f32.mrb[7].mxu1 }
 0x105   : > { %550 = vst.msk [vmem:[%s1072_s7 + $0x10] sm:$0xff] %vm547_vm0, %v845_v56  ;;  %v567_v62 = vsel %vm547_vm0, %v845_v56, 0.0  ;;  %v603_v63 = vmul.f32 %v845_v56, %v845_v56  ;;  %v848_v0 = vadd.f32 %v847_v60, %v846_v57  ;;  %558 = vst.msk [vmem:[%s1072_s7 + $0x50] sm:$0xff] %vm547_vm0, %v1092_v58  ;;  %v1100_v2 = vadd.f32 %v871_v61, %v870_v59 }
 0x106   : > { %v568_v1 = vadd.f32 %v567_v62, %v566_v48  ;;  %v610_v56 = vmul.f32 %v1081_v44, %v1081_v44  ;;  %v632_v61 = vsel %vm547_vm0, %v609_v49, 0.0  ;;  %v581_v62 = vsel %vm547_vm0, %v1081_v44, 0.0 }
 0x107   : > { %v620_v3 = vsel %vm547_vm0, %v603_v63, 0.0  ;;  %551 = vst.msk [vmem:[%s1072_s7 + $0x18] sm:$0xff] %vm547_vm0, %v848_v0  ;;  %v569_v4 = vsel %vm547_vm0, %v848_v0, 0.0  ;;  %v604_v5 = vmul.f32 %v848_v0, %v848_v0  ;;  %559 = vst.msk [vmem:[%s1072_s7 + $0x58] sm:$0xff] %vm547_vm0, %v1100_v2  ;;  %v611_v63 = vmul.f32 %v1092_v58, %v1092_v58 }
 0x108   : > { %v621_v6 = vadd.f32 %v620_v3, %v619_v53  ;;  %v570_v7 = vadd.f32 %v569_v4, %v568_v1  ;;  %v634_v3 = vsel %vm547_vm0, %v610_v56, 0.0  ;;  %v583_v38 = vsel %vm547_vm0, %v1092_v58, 0.0 }
 0x109   : > { %v622_v8 = vsel %vm547_vm0, %v604_v5, 0.0  ;;  %v849_v9 = vpop.f32.mrb[8].mxu0  ;;  %v873_v10 = vpop.f32.mrb[8].mxu1  ;;  %v612_v4 = vmul.f32 %v1100_v2, %v1100_v2  ;;  %v585_v44 = vsel %vm547_vm0, %v1100_v2, 0.0 }
 0x10a   : > { %v623_v11 = vadd.f32 %v622_v8, %v621_v6  ;;  %v850_v12 = vpop.f32.mrb[9].mxu0  ;;  %v874_v13 = vpop.f32.mrb[9].mxu1 }
 0x10b   : > { %v851_v14 = vadd.f32 %v850_v12, %v849_v9  ;;  %v852_v15 = vpop.f32.mrb[10].mxu0  ;;  %v1110_v16 = vadd.f32 %v874_v13, %v873_v10  ;;  %v876_v17 = vpop.f32.mrb[10].mxu1 }
 0x10c   : > { %v853_v18 = vpop.f32.mrb[11].mxu0  ;;  %v877_v19 = vpop.f32.mrb[11].mxu1 }
 0x10d   : > { %552 = vst.msk [vmem:[%s1072_s7 + $0x20] sm:$0xff] %vm547_vm0, %v851_v14  ;;  %v571_v20 = vsel %vm547_vm0, %v851_v14, 0.0  ;;  %v605_v21 = vmul.f32 %v851_v14, %v851_v14  ;;  %v854_v22 = vadd.f32 %v853_v18, %v852_v15  ;;  %560 = vst.msk [vmem:[%s1072_s7 + $0x60] sm:$0xff] %vm547_vm0, %v1110_v16  ;;  %v878_v24 = vadd.f32 %v877_v19, %v876_v17 }
 0x10e   : > { %v572_v23 = vadd.f32 %v571_v20, %v570_v7  ;;  %v636_v7 = vsel %vm547_vm0, %v611_v63, 0.0  ;;  %v613_v8 = vmul.f32 %v1110_v16, %v1110_v16  ;;  %v587_v58 = vsel %vm547_vm0, %v1110_v16, 0.0 }
 0x10f   : > { %v624_v25 = vsel %vm547_vm0, %v605_v21, 0.0  ;;  %553 = vst.msk [vmem:[%s1072_s7 + $0x28] sm:$0xff] %vm547_vm0, %v854_v22  ;;  %v573_v26 = vsel %vm547_vm0, %v854_v22, 0.0  ;;  %v606_v27 = vmul.f32 %v854_v22, %v854_v22  ;;  %561 = vst.msk [vmem:[%s1072_s7 + $0x68] sm:$0xff] %vm547_vm0, %v878_v24  ;;  %v614_v12 = vmul.f32 %v878_v24, %v878_v24 }
 0x110   : > { %v625_v28 = vadd.f32 %v624_v25, %v623_v11  ;;  %v574_v29 = vadd.f32 %v573_v26, %v572_v23  ;;  %v638_v11 = vsel %vm547_vm0, %v612_v4, 0.0  ;;  %v640_v17 = vsel %vm547_vm0, %v613_v8, 0.0 }
 0x111   : > { %v626_v30 = vsel %vm547_vm0, %v606_v27, 0.0  ;;  %v855_v31 = vpop.f32.mrb[12].mxu0  ;;  %v879_v32 = vpop.f32.mrb[12].mxu1  ;;  %v589_v18 = vsel %vm547_vm0, %v878_v24, 0.0  ;;  %v642_v21 = vsel %vm547_vm0, %v614_v12, 0.0 }
 0x112   : > { %v627_v33 = vadd.f32 %v626_v30, %v625_v28  ;;  %v856_v34 = vpop.f32.mrb[13].mxu0  ;;  %v880_v35 = vpop.f32.mrb[13].mxu1 }
 0x113   : > { %v857_v36 = vadd.f32 %v856_v34, %v855_v31  ;;  %v858_v37 = vpop.f32.mrb[14].mxu0  ;;  %v881_v39 = vadd.f32 %v880_v35, %v879_v32  ;;  %v882_v40 = vpop.f32.mrb[14].mxu1 }
 0x114   : > { %v859_v41 = vpop.f32.mrb[15].mxu0  ;;  %v883_v42 = vpop.f32.mrb[15].mxu1 }
 0x115   : > { %554 = vst.msk [vmem:[%s1072_s7 + $0x30] sm:$0xff] %vm547_vm0, %v857_v36  ;;  %v575_v43 = vsel %vm547_vm0, %v857_v36, 0.0  ;;  %v607_v45 = vmul.f32 %v857_v36, %v857_v36  ;;  %v860_v46 = vadd.f32 %v859_v41, %v858_v37  ;;  %562 = vst.msk [vmem:[%s1072_s7 + $0x70] sm:$0xff] %vm547_vm0, %v881_v39  ;;  %v884_v48 = vadd.f32 %v883_v42, %v882_v40 }
 0x116   : > { %v576_v47 = vadd.f32 %v575_v43, %v574_v29  ;;  %v615_v13 = vmul.f32 %v881_v39, %v881_v39  ;;  %v591_v2 = vsel %vm547_vm0, %v881_v39, 0.0 }
 0x117   : > { %v628_v50 = vsel %vm547_vm0, %v607_v45, 0.0  ;;  %555 = vst.msk [vmem:[%s1072_s7 + $0x38] sm:$0xff] %vm547_vm0, %v860_v46  ;;  %v577_v51 = vsel %vm547_vm0, %v860_v46, 0.0  ;;  %v608_v52 = vmul.f32 %v860_v46, %v860_v46  ;;  %563 = vst.msk [vmem:[%s1072_s7 + $0x78] sm:$0xff] %vm547_vm0, %v884_v48  ;;  %v616_v23 = vmul.f32 %v884_v48, %v884_v48 }
 0x118   : > { %v629_v53 = vadd.f32 %v628_v50, %v627_v33  ;;  %v578_v54 = vadd.f32 %v577_v51, %v576_v47  ;;  %v644_v22 = vsel %vm547_vm0, %v615_v13, 0.0  ;;  %v593_v26 = vsel %vm547_vm0, %v884_v48, 0.0 }
 0x119   : > { %v630_v57 = vsel %vm547_vm0, %v608_v52, 0.0  ;;  %v646_v29 = vsel %vm547_vm0, %v616_v23, 0.0 }
 0x11a   : > { %v580_v59 = vadd.f32 %v579_v55, %v578_v54  ;;  %v631_v60 = vadd.f32 %v630_v57, %v629_v53 }
 0x11c   : > { %v582_v0 = vadd.f32 %v581_v62, %v580_v59  ;;  %v633_v1 = vadd.f32 %v632_v61, %v631_v60 }
 0x11e   : > { %v635_v5 = vadd.f32 %v634_v3, %v633_v1  ;;  %v584_v6 = vadd.f32 %v583_v38, %v582_v0 }
 0x120   : > { %v586_v9 = vadd.f32 %v585_v44, %v584_v6  ;;  %v637_v10 = vadd.f32 %v636_v7, %v635_v5 }
 0x122   : > { %v588_v14 = vadd.f32 %v587_v58, %v586_v9  ;;  %v639_v15 = vadd.f32 %v638_v11, %v637_v10 }
 0x124   : > { %v641_v19 = vadd.f32 %v640_v17, %v639_v15  ;;  %v590_v20 = vadd.f32 %v589_v18, %v588_v14 }
 0x126   : > { %v643_v16 = vadd.f32 %v642_v21, %v641_v19  ;;  %v592_v25 = vadd.f32 %v591_v2, %v590_v20 }
 0x128   : > { %v645_v27 = vadd.f32 %v644_v22, %v643_v16  ;;  %v594_v28 = vadd.f32 %v593_v26, %v592_v25 }
 0x12a   : > { %v595_v24 = vrot.slane %v594_v28, 4  ;;  %v647_v30 = vadd.f32 %v646_v29, %v645_v27 }
 0x12c   : > { %v596_v31 = vadd.f32 %v595_v24, %v594_v28  ;;  %v648_v32 = vrot.slane %v647_v30, 4 }
 0x12e   : > { %v597_v33 = vrot.slane %v596_v31, 2  ;;  %v649_v34 = vadd.f32 %v648_v32, %v647_v30 }
 0x130   : > { %v598_v35 = vadd.f32 %v597_v33, %v596_v31  ;;  %v650_v36 = vrot.slane %v649_v34, 2 }
 0x132   : > { %v599_v37 = vrot.slane %v598_v35, 1  ;;  %v651_v39 = vadd.f32 %v650_v36, %v649_v34 }
 0x134   : > { %v600_v40 = vadd.f32 %v599_v37, %v598_v35  ;;  %v652_v41 = vrot.slane %v651_v39, 1 }
 0x136   : > { %v653_v42 = vadd.f32 %v652_v41, %v651_v39  ;;  %654 = vst.msk [vmem:[%s220_s10] sm:$0xff] %vm547_vm0, %v600_v40 }
 0x138   : > { %655 = vst.msk [vmem:[%s224_s13] sm:$0xff] %vm547_vm0, %v653_v42 }
 0x139 PF: > { %s15_s15 = sadd.s32 1, %s955_s15  }
 0x13a   : > { %p12_p5 = scmp.ge.s32.totalorder %s15_s15, 5  }
 0x13c   :  { %14 = sbr.rel (!%p12_p5) target bundleno = 1 (0x1), region = 82 }

// kernel: basic_block.5
= control target key start
LH: loop header
LB: loop body
LE: loop exit
PB: predicated region body
PF: predicated region fallthrough
CT: control target
= control target key end

     0   :  { %s658_s21 = smov 0   ;;  %s835_s0 = inlined_call_operand.vmem [shape: f32[384,16], index: 0, kind: input, shape index: {}]   ;;  %s836_s1 = inlined_call_operand.vmem [shape: f32[384,32], index: 1, kind: input, shape index: {}]   ;;  %s837_s2 = inlined_call_operand.vmem [shape: f32[1,16], index: 2, kind: input, shape index: {}]   ;;  %s838_s3 = inlined_call_operand.vmem [shape: f32[1,16], index: 3, kind: input, shape index: {}]   ;;  %s839_s4 = inlined_call_operand.vmem [shape: f32[1,16], index: 4, kind: input, shape index: {}]   ;;  %s840_s5 = inlined_call_operand.vmem [shape: f32[1,16], index: 5, kind: input, shape index: {}]   ;;  %s841_s6 = inlined_call_operand.vmem [shape: f32[384,16], index: 6, kind: output, shape index: {}]  }
   0x1 LB: > { %s586_s22 = sadd.s32 4294967295, %s619_s21   ;;  %p590_p0 = scmp.ge.s32.totalorder %s619_s21, 1  ;;  %s619_s21 = sphi %s658_s21, %s16_s21  }
   0x2   : > { %p224_p1 = scmp.lt.s32.totalorder %s619_s21, 4 }
   0x4   : > { %p225_p2 = pnand %p590_p0, %p224_p1 }
   0x5   : > { %v599_v0 = vld [vmem:[%s839_s4] ss:$0 sm:$0xff] (!%p225_p2)  ;;  %s621_s25 = smov (!%p225_p2), 16   ;;  %s591_s28 = sshll.u32 (!%p225_p2), %s586_s22, 4  ;;  %vm501_vm0 = vcmask (!%p225_p2), 130048  }
   0x6   : > { %228 = sbr.rel (%p225_p2) target bundleno = 279 (0x117), region = 44  ;;  %361 = vrot.lane.b32.xlu0 (!%p225_p2), %v599_v0, %s621_s25  ;;  %v600_v1 = vld [vmem:[%s840_s5] ss:$0 sm:$0xff] (!%p225_p2)  ;;  %p260_p3 = scmp.lt.s32.totalorder (!%p225_p2), %s591_s28, 47 }
   0x7   : > { %s622_s9 = smov (!%p225_p2), 112   ;;  %v739_v52 = vld [vmem:[%s837_s2] ss:$0 sm:$0xff] (!%p225_p2) }
   0x8   : > { %v750_v59 = vld [vmem:[%s838_s3] ss:$0 sm:$0xff] (!%p225_p2) }
   0xa   : > { %386 = vrot.lane.b32.xlu0 (!%p225_p2), %v600_v1, %s621_s25 }
   0xd   : > { %s843_s28 = smov (!%p260_p3, %s591_s28), 47 }
   0xe   : > { %s672_s29 = sshll.u32 %s843_s28, 3 }
   0xf   : > { %s678_s8 = scalar_lea.vmem %s836_s1, %s672_s29  ;;  %s734_s12 = scalar_lea.vmem %s835_s0, %s672_s29 }
  0x10   : > { %v279_v3 = vld [vmem:[%s678_s8 + $0x10] sm:$0xff]  ;;  %v277_v4 = vld [vmem:[%s678_s8] sm:$0xff]  ;;  %v278_v9 = vld [vmem:[%s678_s8 + $0x8] sm:$0xff]  ;;  %s768_s19 = scalar_lea.vmem %s841_s6, %s672_s29 }
  0x11   : > { %v281_v8 = vld [vmem:[%s678_s8 + $0x20] sm:$0xff]  ;;  %v283_v14 = vld [vmem:[%s678_s8 + $0x30] sm:$0xff]  ;;  %v280_v15 = vld [vmem:[%s678_s8 + $0x18] sm:$0xff] }
  0x12   : > { %v285_v20 = vld [vmem:[%s678_s8 + $0x40] sm:$0xff]  ;;  %v282_v21 = vld [vmem:[%s678_s8 + $0x28] sm:$0xff]  ;;  %v287_v26 = vld [vmem:[%s678_s8 + $0x50] sm:$0xff] }
  0x13   : > { %v284_v27 = vld [vmem:[%s678_s8 + $0x38] sm:$0xff]  ;;  %v289_v32 = vld [vmem:[%s678_s8 + $0x60] sm:$0xff]  ;;  %v286_v33 = vld [vmem:[%s678_s8 + $0x48] sm:$0xff] }
  0x14   : > { %v291_v38 = vld [vmem:[%s678_s8 + $0x70] sm:$0xff]  ;;  %v288_v39 = vld [vmem:[%s678_s8 + $0x58] sm:$0xff]  ;;  %v290_v44 = vld [vmem:[%s678_s8 + $0x68] sm:$0xff] }
  0x15   : > { %v292_v48 = vld [vmem:[%s678_s8 + $0x78] sm:$0xff]  ;;  %v295_v53 = vld [vmem:[%s734_s12 + $0x10] sm:$0xff]  ;;  %v293_v54 = vld [vmem:[%s734_s12] sm:$0xff] }
  0x16   : > { %v318_v55 = vmul.f32 %v739_v52, %v295_v53  ;;  %v316_v56 = vmul.f32 %v739_v52, %v293_v54  ;;  %v297_v57 = vld [vmem:[%s734_s12 + $0x20] sm:$0xff]  ;;  %v294_v58 = vld [vmem:[%s734_s12 + $0x8] sm:$0xff]  ;;  %v299_v0 = vld [vmem:[%s734_s12 + $0x30] sm:$0xff] }
  0x17   : > { %v320_v60 = vmul.f32 %v739_v52, %v297_v57  ;;  %v317_v61 = vmul.f32 %v739_v52, %v294_v58  ;;  %v296_v1 = vld [vmem:[%s734_s12 + $0x18] sm:$0xff] }
  0x18   : > { %v341_v62 = vadd.f32 %v750_v59, %v318_v55  ;;  %v339_v63 = vadd.f32 %v750_v59, %v316_v56 }
  0x78   : > { %v680_v2 = vpop.permute.xlu0 %361 }
  0x79   : > { %v366_v5 = vmul.f32 %v680_v2, %v279_v3  ;;  %v364_v6 = vmul.f32 %v680_v2, %v277_v4  ;;  %v368_v12 = vmul.f32 %v680_v2, %v281_v8  ;;  %v365_v13 = vmul.f32 %v680_v2, %v278_v9 }
  0x7a   : > { %v370_v18 = vmul.f32 %v680_v2, %v283_v14  ;;  %v367_v19 = vmul.f32 %v680_v2, %v280_v15  ;;  %v372_v24 = vmul.f32 %v680_v2, %v285_v20  ;;  %v369_v25 = vmul.f32 %v680_v2, %v282_v21 }
  0x7b   : > { %v374_v30 = vmul.f32 %v680_v2, %v287_v26  ;;  %v371_v31 = vmul.f32 %v680_v2, %v284_v27  ;;  %v376_v36 = vmul.f32 %v680_v2, %v289_v32  ;;  %v373_v37 = vmul.f32 %v680_v2, %v286_v33 }
  0x7c   : > { %v387_v7 = vpop.permute.xlu0 %386  ;;  %v378_v42 = vmul.f32 %v680_v2, %v291_v38  ;;  %v375_v43 = vmul.f32 %v680_v2, %v288_v39  ;;  %v377_v47 = vmul.f32 %v680_v2, %v290_v44  ;;  %v379_v50 = vmul.f32 %v680_v2, %v292_v48 }
  0x7d   : > { %v391_v10 = vadd.f32 %v387_v7, %v366_v5  ;;  %v389_v11 = vadd.f32 %v387_v7, %v364_v6  ;;  %v393_v16 = vadd.f32 %v387_v7, %v368_v12  ;;  %v390_v17 = vadd.f32 %v387_v7, %v365_v13 }
  0x7e   : > { %v395_v22 = vadd.f32 %v387_v7, %v370_v18  ;;  %v392_v23 = vadd.f32 %v387_v7, %v367_v19  ;;  %v397_v28 = vadd.f32 %v387_v7, %v372_v24  ;;  %v394_v29 = vadd.f32 %v387_v7, %v369_v25 }
  0x7f   : > { %425 = vrot.lane.b32.xlu0 %v391_v10, %s622_s9  ;;  %421 = vrot.lane.b32.xlu1 %v389_v11, %s622_s9  ;;  %v399_v34 = vadd.f32 %v387_v7, %v374_v30  ;;  %v396_v35 = vadd.f32 %v387_v7, %v371_v31  ;;  %v401_v40 = vadd.f32 %v387_v7, %v376_v36  ;;  %v301_v10 = vld [vmem:[%s734_s12 + $0x40] sm:$0xff]  ;;  %v298_v11 = vld [vmem:[%s734_s12 + $0x28] sm:$0xff] }
  0x80   : > { %v398_v41 = vadd.f32 %v387_v7, %v373_v37  ;;  %v403_v45 = vadd.f32 %v387_v7, %v378_v42  ;;  %v400_v46 = vadd.f32 %v387_v7, %v375_v43  ;;  %v402_v49 = vadd.f32 %v387_v7, %v377_v47  ;;  %v304_v47 = vld [vmem:[%s734_s12 + $0x58] sm:$0xff] }
  0x81   : > { %v404_v51 = vadd.f32 %v387_v7, %v379_v50  ;;  %v343_v4 = vadd.f32 %v750_v59, %v320_v60  ;;  %v340_v5 = vadd.f32 %v750_v59, %v317_v61  ;;  %v322_v8 = vmul.f32 %v739_v52, %v299_v0  ;;  %v306_v60 = vld [vmem:[%s734_s12 + $0x68] sm:$0xff] }
  0x82   : > { %v319_v9 = vmul.f32 %v739_v52, %v296_v1  ;;  %v327_v58 = vmul.f32 %v739_v52, %v304_v47 }
  0x83   : > { %429 = vrot.lane.b32.xlu0 %v393_v16, %s622_s9  ;;  %423 = vrot.lane.b32.xlu1 %v390_v17, %s622_s9  ;;  %v324_v16 = vmul.f32 %v739_v52, %v301_v10  ;;  %v321_v17 = vmul.f32 %v739_v52, %v298_v11  ;;  %v345_v20 = vadd.f32 %v750_v59, %v322_v8 }
  0x84   : > { %v342_v21 = vadd.f32 %v750_v59, %v319_v9 }
  0x85   : > { %v347_v32 = vadd.f32 %v750_v59, %v324_v16  ;;  %v344_v33 = vadd.f32 %v750_v59, %v321_v17 }
  0x87   : > { %433 = vrot.lane.b32.xlu0 %v395_v22, %s622_s9  ;;  %427 = vrot.lane.b32.xlu1 %v392_v23, %s622_s9  ;;  %v303_v22 = vld [vmem:[%s734_s12 + $0x50] sm:$0xff]  ;;  %v300_v23 = vld [vmem:[%s734_s12 + $0x38] sm:$0xff] }
  0x8b   : > { %437 = vrot.lane.b32.xlu0 %v397_v28, %s622_s9  ;;  %431 = vrot.lane.b32.xlu1 %v394_v29, %s622_s9  ;;  %v326_v28 = vmul.f32 %v739_v52, %v303_v22  ;;  %v323_v29 = vmul.f32 %v739_v52, %v300_v23 }
  0x8d   : > { %v346_v44 = vadd.f32 %v750_v59, %v323_v29 }
  0x8f   : > { %441 = vrot.lane.b32.xlu0 %v399_v34, %s622_s9  ;;  %435 = vrot.lane.b32.xlu1 %v396_v35, %s622_s9  ;;  %v305_v34 = vld [vmem:[%s734_s12 + $0x60] sm:$0xff]  ;;  %v302_v35 = vld [vmem:[%s734_s12 + $0x48] sm:$0xff] }
  0x93   : > { %445 = vrot.lane.b32.xlu0 %v401_v40, %s622_s9  ;;  %439 = vrot.lane.b32.xlu1 %v398_v41, %s622_s9  ;;  %v349_v40 = vadd.f32 %v750_v59, %v326_v28  ;;  %v328_v41 = vmul.f32 %v739_v52, %v305_v34 }
  0x95   : > { %v351_v53 = vadd.f32 %v750_v59, %v328_v41 }
  0x97   : > { %449 = vrot.lane.b32.xlu0 %v403_v45, %s622_s9  ;;  %443 = vrot.lane.b32.xlu1 %v400_v46, %s622_s9  ;;  %v325_v45 = vmul.f32 %v739_v52, %v302_v35  ;;  %v307_v46 = vld [vmem:[%s734_s12 + $0x70] sm:$0xff] }
  0x98   : > { %v330_v54 = vmul.f32 %v739_v52, %v307_v46 }
  0x99   : > { %v348_v57 = vadd.f32 %v750_v59, %v325_v45 }
  0x9a   : > { %v353_v1 = vadd.f32 %v750_v59, %v330_v54 }
  0x9b   : > { %447 = vrot.lane.b32.xlu1 %v402_v49, %s622_s9 }
  0x9f   : > { %451 = vrot.lane.b32.xlu1 %v404_v51, %s622_s9 }
  0xf1   : > { %v426_v2 = vpop.permute.xlu0 %425  ;;  %v422_v3 = vpop.permute.xlu1 %421 }
  0xf2   : > { %v471_v6 = vadd.f32 %v426_v2, %v341_v62  ;;  %v469_v7 = vadd.f32 %v422_v3, %v339_v63 }
  0xf4   : > { %v487_v12 = vmax.f32 %v471_v6, 0.0  ;;  %v485_v13 = vmax.f32 %v469_v7, 0.0  ;;  %v308_v6 = vld [vmem:[%s734_s12 + $0x78] sm:$0xff] }
  0xf5   : > { %v430_v14 = vpop.permute.xlu0 %429  ;;  %v424_v15 = vpop.permute.xlu1 %423 }
  0xf6   : > { %504 = vst.msk [vmem:[%s768_s19 + $0x10] sm:$0xff] %vm501_vm0, %v487_v12  ;;  %502 = vst.msk [vmem:[%s768_s19] sm:$0xff] %vm501_vm0, %v485_v13  ;;  %v473_v18 = vadd.f32 %v430_v14, %v343_v4  ;;  %v470_v19 = vadd.f32 %v424_v15, %v340_v5  ;;  %v350_v4 = vadd.f32 %v750_v59, %v327_v58 }
  0xf7   : > { %v329_v5 = vmul.f32 %v739_v52, %v306_v60  ;;  %v331_v14 = vmul.f32 %v739_v52, %v308_v6 }
  0xf8   : > { %v489_v24 = vmax.f32 %v473_v18, 0.0  ;;  %v486_v25 = vmax.f32 %v470_v19, 0.0 }
  0xf9   : > { %v434_v26 = vpop.permute.xlu0 %433  ;;  %v428_v27 = vpop.permute.xlu1 %427  ;;  %v352_v13 = vadd.f32 %v750_v59, %v329_v5  ;;  %v354_v19 = vadd.f32 %v750_v59, %v331_v14 }
  0xfa   : > { %506 = vst.msk [vmem:[%s768_s19 + $0x20] sm:$0xff] %vm501_vm0, %v489_v24  ;;  %503 = vst.msk [vmem:[%s768_s19 + $0x8] sm:$0xff] %vm501_vm0, %v486_v25  ;;  %v475_v30 = vadd.f32 %v434_v26, %v345_v20  ;;  %v472_v31 = vadd.f32 %v428_v27, %v342_v21 }
  0xfc   : > { %v491_v36 = vmax.f32 %v475_v30, 0.0  ;;  %v488_v37 = vmax.f32 %v472_v31, 0.0 }
  0xfd   : > { %v438_v38 = vpop.permute.xlu0 %437  ;;  %v432_v39 = vpop.permute.xlu1 %431 }
  0xfe   : > { %508 = vst.msk [vmem:[%s768_s19 + $0x30] sm:$0xff] %vm501_vm0, %v491_v36  ;;  %505 = vst.msk [vmem:[%s768_s19 + $0x18] sm:$0xff] %vm501_vm0, %v488_v37  ;;  %v477_v42 = vadd.f32 %v438_v38, %v347_v32  ;;  %v474_v43 = vadd.f32 %v432_v39, %v344_v33 }
 0x100   : > { %v493_v48 = vmax.f32 %v477_v42, 0.0  ;;  %v490_v49 = vmax.f32 %v474_v43, 0.0 }
 0x101   : > { %v442_v50 = vpop.permute.xlu0 %441  ;;  %v436_v51 = vpop.permute.xlu1 %435 }
 0x102   : > { %510 = vst.msk [vmem:[%s768_s19 + $0x40] sm:$0xff] %vm501_vm0, %v493_v48  ;;  %507 = vst.msk [vmem:[%s768_s19 + $0x28] sm:$0xff] %vm501_vm0, %v490_v49  ;;  %v479_v55 = vadd.f32 %v442_v50, %v349_v40  ;;  %v476_v56 = vadd.f32 %v436_v51, %v346_v44 }
 0x104   : > { %v495_v61 = vmax.f32 %v479_v55, 0.0  ;;  %v492_v62 = vmax.f32 %v476_v56, 0.0 }
 0x105   : > { %v446_v63 = vpop.permute.xlu0 %445  ;;  %v440_v0 = vpop.permute.xlu1 %439 }
 0x106   : > { %512 = vst.msk [vmem:[%s768_s19 + $0x50] sm:$0xff] %vm501_vm0, %v495_v61  ;;  %509 = vst.msk [vmem:[%s768_s19 + $0x38] sm:$0xff] %vm501_vm0, %v492_v62  ;;  %v481_v2 = vadd.f32 %v446_v63, %v351_v53  ;;  %v478_v3 = vadd.f32 %v440_v0, %v348_v57 }
 0x108   : > { %v497_v7 = vmax.f32 %v481_v2, 0.0  ;;  %v494_v8 = vmax.f32 %v478_v3, 0.0 }
 0x109   : > { %v450_v9 = vpop.permute.xlu0 %449  ;;  %v444_v10 = vpop.permute.xlu1 %443 }
 0x10a   : > { %514 = vst.msk [vmem:[%s768_s19 + $0x60] sm:$0xff] %vm501_vm0, %v497_v7  ;;  %511 = vst.msk [vmem:[%s768_s19 + $0x48] sm:$0xff] %vm501_vm0, %v494_v8  ;;  %v483_v11 = vadd.f32 %v450_v9, %v353_v1  ;;  %v480_v12 = vadd.f32 %v444_v10, %v350_v4 }
 0x10c   : > { %v499_v15 = vmax.f32 %v483_v11, 0.0  ;;  %v496_v16 = vmax.f32 %v480_v12, 0.0 }
 0x10d   : > { %v448_v17 = vpop.permute.xlu1 %447 }
 0x10e   : > { %516 = vst.msk [vmem:[%s768_s19 + $0x70] sm:$0xff] %vm501_vm0, %v499_v15  ;;  %513 = vst.msk [vmem:[%s768_s19 + $0x58] sm:$0xff] %vm501_vm0, %v496_v16  ;;  %v482_v18 = vadd.f32 %v448_v17, %v352_v13 }
 0x110   : > { %v498_v20 = vmax.f32 %v482_v18, 0.0 }
 0x111   : > { %v452_v21 = vpop.permute.xlu1 %451 }
 0x112   : > { %515 = vst.msk [vmem:[%s768_s19 + $0x68] sm:$0xff] %vm501_vm0, %v498_v20  ;;  %v484_v22 = vadd.f32 %v452_v21, %v354_v19 }
 0x114   : > { %v500_v23 = vmax.f32 %v484_v22, 0.0 }
 0x116   : > { %517 = vst.msk [vmem:[%s768_s19 + $0x78] sm:$0xff] %vm501_vm0, %v500_v23 }
 0x117 PF: > { %s16_s21 = sadd.s32 1, %s619_s21  }
 0x118   : > { %p13_p4 = scmp.ge.s32.totalorder %s16_s21, 5  }
 0x11a   :  { %15 = sbr.rel (!%p13_p4) target bundleno = 1 (0x1), region = 77 }

// kernel: basic_block.4
= control target key start
LH: loop header
LB: loop body
LE: loop exit
PB: predicated region body
PF: predicated region fallthrough
CT: control target
= control target key end

     0   :  { %s1423_s15 = smov 0   ;;  %s1653_s0 = inlined_call_operand.vmem [shape: bf16[384,512], index: 0, kind: input, shape index: {}]   ;;  %s1654_s1 = inlined_call_operand.vmem [shape: bf16[512,16], index: 1, kind: input, shape index: {}]   ;;  %s1655_s2 = inlined_call_operand.vmem [shape: f32[384,16], index: 2, kind: output, shape index: {0}]   ;;  %s1656_s3 = inlined_call_operand.vmem [shape: f32[24,16], index: 3, kind: output, shape index: {1}]   ;;  %s1657_s4 = inlined_call_operand.vmem [shape: f32[24,16], index: 4, kind: output, shape index: {2}]  }
   0x1 LB: > { %s1429_s16 = sadd.s32 4294967295, %s1396_s15   ;;  %p1099_p0 = scmp.ge.s32.totalorder %s1396_s15, 1  ;;  %s1396_s15 = sphi %s1423_s15, %s15_s15  }
   0x2   : > { %p169_p1 = scmp.lt.s32.totalorder %s1396_s15, 4 }
   0x4   : > { %p170_p2 = pnand %p1099_p0, %p169_p1 }
   0x5   : > { %v1310_v0 = vld [vmem:[%s1654_s1 + $0x40] sm:$0xff] (!%p170_p2)   ;;  %v1314_v4 = vld [vmem:[%s1654_s1 + $0x48] sm:$0xff] (!%p170_p2)   ;;  %v1318_v8 = vld [vmem:[%s1654_s1 + $0x50] sm:$0xff] (!%p170_p2)   ;;  %s1100_s25 = sshll.u32 (!%p170_p2), %s1429_s16, 4  ;;  %vm868_vm0 = vcmask (!%p170_p2), 130048   ;;  %p217_p4 = scmp.lt.s32.totalorder (!%p170_p2), %s1429_s16, 2 }
   0x6   : > { %173 = sbr.rel (%p170_p2) target bundleno = 333 (0x14d), region = 28  ;;  %v1311_v1 = vld [vmem:[%s1654_s1 + $0xc0] sm:$0xff] (!%p170_p2)   ;;  %1174 = vmatprep.subr.bf16.mxu0 (!%p170_p2), %v1310_v0  ;;  %v1315_v5 = vld [vmem:[%s1654_s1 + $0xc8] sm:$0xff] (!%p170_p2)   ;;  %v1319_v9 = vld [vmem:[%s1654_s1 + $0xd0] sm:$0xff] (!%p170_p2)   ;;  %p205_p3 = scmp.lt.s32.totalorder (!%p170_p2), %s1100_s25, 47 }
   0x7   : > { %v1312_v2 = vld [vmem:[%s1654_s1] sm:$0xff] (!%p170_p2)   ;;  %1238 = vmatprep.subr.bf16.mxu1 (!%p170_p2), %v1311_v1  ;;  %v1316_v6 = vld [vmem:[%s1654_s1 + $0x8] sm:$0xff] (!%p170_p2)   ;;  %v1320_v10 = vld [vmem:[%s1654_s1 + $0x10] sm:$0xff] (!%p170_p2)  }
   0x8   : > { %v1313_v3 = vld [vmem:[%s1654_s1 + $0x80] sm:$0xff] (!%p170_p2)   ;;  %1175 = vmatpush3.bf16.msra.mxu0 (!%p170_p2), %v1312_v2  ;;  %v1317_v7 = vld [vmem:[%s1654_s1 + $0x88] sm:$0xff] (!%p170_p2)   ;;  %v1321_v11 = vld [vmem:[%s1654_s1 + $0x90] sm:$0xff] (!%p170_p2)  }
   0x9   : > { %1239 = vmatpush3.bf16.msra.mxu1 (!%p170_p2), %v1313_v3  ;;  %1176 = vmatprep.subr.bf16.mxu0 (!%p170_p2), %v1314_v4  ;;  %v1322_v12 = vld [vmem:[%s1654_s1 + $0x58] sm:$0xff] (!%p170_p2)   ;;  %v1326_v16 = vld [vmem:[%s1654_s1 + $0x60] sm:$0xff] (!%p170_p2)   ;;  %v1330_v20 = vld [vmem:[%s1654_s1 + $0x68] sm:$0xff] (!%p170_p2)  }
   0xa   : > { %1240 = vmatprep.subr.bf16.mxu1 (!%p170_p2), %v1315_v5  ;;  %v1323_v13 = vld [vmem:[%s1654_s1 + $0xd8] sm:$0xff] (!%p170_p2)   ;;  %v1327_v17 = vld [vmem:[%s1654_s1 + $0xe0] sm:$0xff] (!%p170_p2)   ;;  %v1331_v21 = vld [vmem:[%s1654_s1 + $0xe8] sm:$0xff] (!%p170_p2)  }
   0xb   : > { %v1324_v14 = vld [vmem:[%s1654_s1 + $0x18] sm:$0xff] (!%p170_p2)   ;;  %v1328_v18 = vld [vmem:[%s1654_s1 + $0x20] sm:$0xff] (!%p170_p2)   ;;  %v1332_v22 = vld [vmem:[%s1654_s1 + $0x28] sm:$0xff] (!%p170_p2)  }
   0xc   : > { %1177 = vmatpush3.bf16.msra.mxu0 (!%p170_p2), %v1316_v6  ;;  %v1325_v15 = vld [vmem:[%s1654_s1 + $0x98] sm:$0xff] (!%p170_p2)   ;;  %v1329_v19 = vld [vmem:[%s1654_s1 + $0xa0] sm:$0xff] (!%p170_p2)   ;;  %v1333_v23 = vld [vmem:[%s1654_s1 + $0xa8] sm:$0xff] (!%p170_p2)  }
   0xd   : > { %1241 = vmatpush3.bf16.msra.mxu1 %v1317_v7  ;;  %1178 = vmatprep.subr.bf16.mxu0 %v1318_v8  ;;  %s1659_s25 = smov (!%p205_p3, %s1100_s25), 47  ;;  %v1334_v24 = vld [vmem:[%s1654_s1 + $0x70] sm:$0xff]   ;;  %v1338_v28 = vld [vmem:[%s1654_s1 + $0x78] sm:$0xff]   ;;  %s1661_s16 = smov (!%p217_p4, %s1429_s16), 2 }
   0xe   : > { %1242 = vmatprep.subr.bf16.mxu1 %v1319_v9  ;;  %v1335_v25 = vld [vmem:[%s1654_s1 + $0xf0] sm:$0xff]   ;;  %s1173_s24 = sshll.u32 %s1659_s25, 4  ;;  %v1339_v29 = vld [vmem:[%s1654_s1 + $0xf8] sm:$0xff]   ;;  %s1104_s13 = sshll.u32 %s1659_s25, 3 }
   0xf   : > { %v1336_v26 = vld [vmem:[%s1654_s1 + $0x30] sm:$0xff]   ;;  %s1530_s8 = scalar_lea.vmem %s1653_s0, %s1173_s24  ;;  %v1340_v30 = vld [vmem:[%s1654_s1 + $0x38] sm:$0xff]   ;;  %s1574_s18 = scalar_lea.vmem %s1655_s2, %s1104_s13 }
  0x10   : > { %1179 = vmatpush3.bf16.msra.mxu0 %v1320_v10  ;;  %v1337_v27 = vld [vmem:[%s1654_s1 + $0xb0] sm:$0xff]   ;;  %v1341_v31 = vld [vmem:[%s1654_s1 + $0xb8] sm:$0xff]   ;;  %s1105_s25 = sshll.u32 %s1661_s16, 3 }
  0x11   : > { %1243 = vmatpush3.bf16.msra.mxu1 %v1321_v11  ;;  %1180 = vmatprep.subr.bf16.mxu0 %v1322_v12  ;;  %v1342_v32 = vld [vmem:[%s1530_s8] ss:$16 sps:$4 sm:$0xff]   ;;  %v1344_v33 = vld [vmem:[%s1530_s8 + $0x4] ss:$16 sps:$4 sm:$0xff]   ;;  %v1345_v34 = vld [vmem:[%s1530_s8 + $0x8] ss:$16 sps:$4 sm:$0xff]   ;;  %s220_s21 = scalar_lea.vmem %s1656_s3, %s1105_s25  ;;  %s224_s24 = scalar_lea.vmem %s1657_s4, %s1105_s25 }
  0x12   : > { %1244 = vmatprep.subr.bf16.mxu1 %v1323_v13  ;;  %v1347_v35 = vld [vmem:[%s1530_s8 + $0xc] ss:$16 sps:$4 sm:$0xff]   ;;  %706 = vmatprep.mubr.bf16.mxu0 %v1344_v33  ;;  %v1348_v36 = vld [vmem:[%s1530_s8 + $0x24] ss:$16 sps:$4 sm:$0xff]   ;;  %v1352_v38 = vld [vmem:[%s1530_s8 + $0x20] ss:$16 sps:$4 sm:$0xff]  }
  0x13   : > { %803 = vmatprep.mubr.bf16.mxu1 %v1347_v35  ;;  %v1350_v37 = vld [vmem:[%s1530_s8 + $0x2c] ss:$16 sps:$4 sm:$0xff]   ;;  %v1353_v39 = vld [vmem:[%s1530_s8 + $0x28] ss:$16 sps:$4 sm:$0xff]   ;;  %v1354_v40 = vld [vmem:[%s1530_s8 + $0x44] ss:$16 sps:$4 sm:$0xff]  }
  0x14   : > { %1181 = vmatpush3.bf16.msra.mxu0 %v1324_v14  ;;  %v1356_v41 = vld [vmem:[%s1530_s8 + $0x4c] ss:$16 sps:$4 sm:$0xff]   ;;  %v1358_v42 = vld [vmem:[%s1530_s8 + $0x40] ss:$16 sps:$4 sm:$0xff]   ;;  %v1359_v43 = vld [vmem:[%s1530_s8 + $0x48] ss:$16 sps:$4 sm:$0xff]  }
  0x15   : > { %1245 = vmatpush3.bf16.msra.mxu1 %v1325_v15  ;;  %1182 = vmatprep.subr.bf16.mxu0 %v1326_v16  ;;  %v1360_v44 = vld [vmem:[%s1530_s8 + $0x64] ss:$16 sps:$4 sm:$0xff]   ;;  %v1362_v45 = vld [vmem:[%s1530_s8 + $0x6c] ss:$16 sps:$4 sm:$0xff]   ;;  %v1364_v46 = vld [vmem:[%s1530_s8 + $0x60] ss:$16 sps:$4 sm:$0xff]  }
  0x16   : > { %1246 = vmatprep.subr.bf16.mxu1 %v1327_v17  ;;  %v1365_v47 = vld [vmem:[%s1530_s8 + $0x68] ss:$16 sps:$4 sm:$0xff]   ;;  %v1366_v48 = vld [vmem:[%s1530_s8 + $0x84] ss:$16 sps:$4 sm:$0xff]   ;;  %v1368_v49 = vld [vmem:[%s1530_s8 + $0x8c] ss:$16 sps:$4 sm:$0xff]  }
  0x17   : > { %v1370_v50 = vld [vmem:[%s1530_s8 + $0x80] ss:$16 sps:$4 sm:$0xff]   ;;  %v1371_v51 = vld [vmem:[%s1530_s8 + $0x88] ss:$16 sps:$4 sm:$0xff]   ;;  %v1372_v52 = vld [vmem:[%s1530_s8 + $0xa4] ss:$16 sps:$4 sm:$0xff]  }
  0x18   : > { %1183 = vmatpush3.bf16.msra.mxu0 %v1328_v18  ;;  %v1374_v53 = vld [vmem:[%s1530_s8 + $0xac] ss:$16 sps:$4 sm:$0xff]   ;;  %v1376_v54 = vld [vmem:[%s1530_s8 + $0xa0] ss:$16 sps:$4 sm:$0xff]   ;;  %v1377_v55 = vld [vmem:[%s1530_s8 + $0xa8] ss:$16 sps:$4 sm:$0xff]  }
  0x19   : > { %1247 = vmatpush3.bf16.msra.mxu1 %v1329_v19  ;;  %1184 = vmatprep.subr.bf16.mxu0 %v1330_v20  ;;  %v1378_v56 = vld [vmem:[%s1530_s8 + $0xc4] ss:$16 sps:$4 sm:$0xff]   ;;  %v1380_v57 = vld [vmem:[%s1530_s8 + $0xcc] ss:$16 sps:$4 sm:$0xff]   ;;  %v1382_v58 = vld [vmem:[%s1530_s8 + $0xc0] ss:$16 sps:$4 sm:$0xff]  }
  0x1a   : > { %1248 = vmatprep.subr.bf16.mxu1 %v1331_v21  ;;  %v1383_v59 = vld [vmem:[%s1530_s8 + $0xc8] ss:$16 sps:$4 sm:$0xff]   ;;  %v1384_v60 = vld [vmem:[%s1530_s8 + $0xe4] ss:$16 sps:$4 sm:$0xff]   ;;  %v1386_v61 = vld [vmem:[%s1530_s8 + $0xec] ss:$16 sps:$4 sm:$0xff]  }
  0x1b   : > { %v1388_v62 = vld [vmem:[%s1530_s8 + $0xe0] ss:$16 sps:$4 sm:$0xff]   ;;  %v1389_v63 = vld [vmem:[%s1530_s8 + $0xe8] ss:$16 sps:$4 sm:$0xff]  }
  0x1c   : > { %1185 = vmatpush3.bf16.msra.mxu0 %v1332_v22 }
  0x1d   : > { %1249 = vmatpush3.bf16.msra.mxu1 %v1333_v23  ;;  %1186 = vmatprep.subr.bf16.mxu0 %v1334_v24 }
  0x1e   : > { %1250 = vmatprep.subr.bf16.mxu1 %v1335_v25 }
  0x20   : > { %1187 = vmatpush3.bf16.msra.mxu0 %v1336_v26 }
  0x21   : > { %1251 = vmatpush3.bf16.msra.mxu1 %v1337_v27  ;;  %1188 = vmatprep.subr.bf16.mxu0 %v1338_v28 }
  0x22   : > { %1252 = vmatprep.subr.bf16.mxu1 %v1339_v29 }
  0x24   : > { %1189 = vmatpush3.bf16.msra.mxu0 %v1340_v30 }
  0x25   : > { %1253 = vmatpush3.bf16.msra.mxu1 %v1341_v31 }
  0x27   : > { %707 = vmatmul.mubr.bf16.vlgmr.msra.gmra.mrb[0].mxu0 %v1342_v32 }
  0x28   : > { %804 = vmatmul.mubr.bf16.vlgmr.msra.gmra.mrb[0].mxu1 %v1345_v34  ;;  %714 = vmatprep.mubr.bf16.mxu0 %v1348_v36 }
  0x29   : > { %811 = vmatprep.mubr.bf16.mxu1 %v1350_v37 }
  0x2f   : > { %715 = vmatmul.mubr.bf16.gmra.mrb[4].mxu0 %v1352_v38 }
  0x30   : > { %812 = vmatmul.mubr.bf16.gmra.mrb[4].mxu1 %v1353_v39  ;;  %722 = vmatprep.mubr.bf16.mxu0 %v1354_v40 }
  0x31   : > { %819 = vmatprep.mubr.bf16.mxu1 %v1356_v41 }
  0x37   : > { %723 = vmatmul.mubr.bf16.gmra.mrb[8].mxu0 %v1358_v42 }
  0x38   : > { %820 = vmatmul.mubr.bf16.gmra.mrb[8].mxu1 %v1359_v43  ;;  %730 = vmatprep.mubr.bf16.mxu0 %v1360_v44 }
  0x39   : > { %827 = vmatprep.mubr.bf16.mxu1 %v1362_v45 }
  0x3f   : > { %731 = vmatmul.mubr.bf16.gmra.mrb[12].mxu0 %v1364_v46 }
  0x40   : > { %828 = vmatmul.mubr.bf16.gmra.mrb[12].mxu1 %v1365_v47  ;;  %738 = vmatprep.mubr.bf16.mxu0 %v1366_v48 }
  0x41   : > { %835 = vmatprep.mubr.bf16.mxu1 %v1368_v49 }
  0x47   : > { %739 = vmatmul.mubr.bf16.gmra.mrb[16].mxu0 %v1370_v50 }
  0x48   : > { %836 = vmatmul.mubr.bf16.gmra.mrb[16].mxu1 %v1371_v51  ;;  %746 = vmatprep.mubr.bf16.mxu0 %v1372_v52 }
  0x49   : > { %843 = vmatprep.mubr.bf16.mxu1 %v1374_v53 }
  0x4f   : > { %747 = vmatmul.mubr.bf16.gmra.mrb[20].mxu0 %v1376_v54 }
  0x50   : > { %844 = vmatmul.mubr.bf16.gmra.mrb[20].mxu1 %v1377_v55  ;;  %754 = vmatprep.mubr.bf16.mxu0 %v1378_v56 }
  0x51   : > { %851 = vmatprep.mubr.bf16.mxu1 %v1380_v57 }
  0x57   : > { %755 = vmatmul.mubr.bf16.gmra.mrb[24].mxu0 %v1382_v58 }
  0x58   : > { %852 = vmatmul.mubr.bf16.gmra.mrb[24].mxu1 %v1383_v59  ;;  %762 = vmatprep.mubr.bf16.mxu0 %v1384_v60 }
  0x59   : > { %859 = vmatprep.mubr.bf16.mxu1 %v1386_v61 }
  0x5f   : > { %763 = vmatmul.mubr.bf16.gmra.mrb[28].mxu0 %v1388_v62 }
  0x60   : > { %860 = vmatmul.mubr.bf16.gmra.mrb[28].mxu1 %v1389_v63 }
  0xfa   : > { %v1190_v0 = vpop.f32.mrb[0].mxu0 }
  0xfb   : > { %v1254_v1 = vpop.f32.mrb[0].mxu1  ;;  %v1191_v2 = vpop.f32.mrb[1].mxu0 }
  0xfc   : > { %v1192_v3 = vadd.f32 %v1191_v2, %v1190_v0  ;;  %v1255_v4 = vpop.f32.mrb[1].mxu1  ;;  %v1193_v5 = vpop.f32.mrb[2].mxu0 }
  0xfd   : > { %v1256_v6 = vadd.f32 %v1255_v4, %v1254_v1  ;;  %v1257_v7 = vpop.f32.mrb[2].mxu1  ;;  %v1194_v8 = vpop.f32.mrb[3].mxu0 }
  0xfe   : > { %v1195_v9 = vadd.f32 %v1194_v8, %v1193_v5  ;;  %v1258_v10 = vpop.f32.mrb[3].mxu1 }
  0xff   : > { %v806_v11 = vadd.f32 %v1256_v6, %v1192_v3  ;;  %v1259_v12 = vadd.f32 %v1258_v10, %v1257_v7 }
 0x101   : > { %869 = vst.msk [vmem:[%s1574_s18] sm:$0xff] %vm868_vm0, %v806_v11  ;;  %v922_v13 = vmul.f32 %v806_v11, %v806_v11  ;;  %v809_v14 = vadd.f32 %v1259_v12, %v1195_v9  ;;  %v885_v16 = vsel %vm868_vm0, %v806_v11, 0.0 }
 0x102   : > { %v1196_v15 = vpop.f32.mrb[4].mxu0 }
 0x103   : > { %870 = vst.msk [vmem:[%s1574_s18 + $0x8] sm:$0xff] %vm868_vm0, %v809_v14  ;;  %v886_v17 = vsel %vm868_vm0, %v809_v14, 0.0  ;;  %v923_v18 = vmul.f32 %v809_v14, %v809_v14  ;;  %v1260_v19 = vpop.f32.mrb[4].mxu1  ;;  %v1197_v20 = vpop.f32.mrb[5].mxu0  ;;  %v938_v25 = vsel %vm868_vm0, %v922_v13, 0.0 }
 0x104   : > { %v887_v21 = vadd.f32 %v886_v17, %v885_v16  ;;  %v1198_v22 = vadd.f32 %v1197_v20, %v1196_v15  ;;  %v1261_v23 = vpop.f32.mrb[5].mxu1  ;;  %v1199_v24 = vpop.f32.mrb[6].mxu0 }
 0x105   : > { %v939_v26 = vsel %vm868_vm0, %v923_v18, 0.0  ;;  %v1262_v27 = vadd.f32 %v1261_v23, %v1260_v19  ;;  %v1263_v28 = vpop.f32.mrb[6].mxu1  ;;  %v1200_v29 = vpop.f32.mrb[7].mxu0 }
 0x106   : > { %v940_v30 = vadd.f32 %v939_v26, %v938_v25  ;;  %v1201_v31 = vadd.f32 %v1200_v29, %v1199_v24  ;;  %v1264_v32 = vpop.f32.mrb[7].mxu1 }
 0x107   : > { %v814_v33 = vadd.f32 %v1262_v27, %v1198_v22  ;;  %v1265_v34 = vadd.f32 %v1264_v32, %v1263_v28 }
 0x109   : > { %871 = vst.msk [vmem:[%s1574_s18 + $0x10] sm:$0xff] %vm868_vm0, %v814_v33  ;;  %v888_v35 = vsel %vm868_vm0, %v814_v33, 0.0  ;;  %v924_v36 = vmul.f32 %v814_v33, %v814_v33  ;;  %v817_v37 = vadd.f32 %v1265_v34, %v1201_v31 }
 0x10a   : > { %v889_v38 = vadd.f32 %v888_v35, %v887_v21  ;;  %v1202_v39 = vpop.f32.mrb[8].mxu0 }
 0x10b   : > { %v941_v40 = vsel %vm868_vm0, %v924_v36, 0.0  ;;  %872 = vst.msk [vmem:[%s1574_s18 + $0x18] sm:$0xff] %vm868_vm0, %v817_v37  ;;  %v890_v41 = vsel %vm868_vm0, %v817_v37, 0.0  ;;  %v925_v42 = vmul.f32 %v817_v37, %v817_v37  ;;  %v1266_v43 = vpop.f32.mrb[8].mxu1  ;;  %v1203_v44 = vpop.f32.mrb[9].mxu0 }
 0x10c   : > { %v942_v45 = vadd.f32 %v941_v40, %v940_v30  ;;  %v891_v46 = vadd.f32 %v890_v41, %v889_v38  ;;  %v1204_v47 = vadd.f32 %v1203_v44, %v1202_v39  ;;  %v1267_v48 = vpop.f32.mrb[9].mxu1  ;;  %v1205_v49 = vpop.f32.mrb[10].mxu0 }
 0x10d   : > { %v943_v50 = vsel %vm868_vm0, %v925_v42, 0.0  ;;  %v1268_v51 = vadd.f32 %v1267_v48, %v1266_v43  ;;  %v1269_v52 = vpop.f32.mrb[10].mxu1  ;;  %v1206_v53 = vpop.f32.mrb[11].mxu0 }
 0x10e   : > { %v944_v54 = vadd.f32 %v943_v50, %v942_v45  ;;  %v1207_v55 = vadd.f32 %v1206_v53, %v1205_v49  ;;  %v1270_v56 = vpop.f32.mrb[11].mxu1 }
 0x10f   : > { %v822_v57 = vadd.f32 %v1268_v51, %v1204_v47  ;;  %v1271_v58 = vadd.f32 %v1270_v56, %v1269_v52 }
 0x111   : > { %873 = vst.msk [vmem:[%s1574_s18 + $0x20] sm:$0xff] %vm868_vm0, %v822_v57  ;;  %v892_v59 = vsel %vm868_vm0, %v822_v57, 0.0  ;;  %v926_v60 = vmul.f32 %v822_v57, %v822_v57  ;;  %v825_v61 = vadd.f32 %v1271_v58, %v1207_v55 }
 0x112   : > { %v893_v62 = vadd.f32 %v892_v59, %v891_v46  ;;  %v1208_v63 = vpop.f32.mrb[12].mxu0 }
 0x113   : > { %v945_v0 = vsel %vm868_vm0, %v926_v60, 0.0  ;;  %874 = vst.msk [vmem:[%s1574_s18 + $0x28] sm:$0xff] %vm868_vm0, %v825_v61  ;;  %v894_v1 = vsel %vm868_vm0, %v825_v61, 0.0  ;;  %v927_v2 = vmul.f32 %v825_v61, %v825_v61  ;;  %v1272_v3 = vpop.f32.mrb[12].mxu1  ;;  %v1209_v4 = vpop.f32.mrb[13].mxu0 }
 0x114   : > { %v946_v5 = vadd.f32 %v945_v0, %v944_v54  ;;  %v895_v6 = vadd.f32 %v894_v1, %v893_v62  ;;  %v1210_v7 = vadd.f32 %v1209_v4, %v1208_v63  ;;  %v1273_v8 = vpop.f32.mrb[13].mxu1  ;;  %v1211_v9 = vpop.f32.mrb[14].mxu0 }
 0x115   : > { %v947_v10 = vsel %vm868_vm0, %v927_v2, 0.0  ;;  %v1274_v11 = vadd.f32 %v1273_v8, %v1272_v3  ;;  %v1275_v12 = vpop.f32.mrb[14].mxu1  ;;  %v1212_v13 = vpop.f32.mrb[15].mxu0 }
 0x116   : > { %v948_v14 = vadd.f32 %v947_v10, %v946_v5  ;;  %v1213_v15 = vadd.f32 %v1212_v13, %v1211_v9  ;;  %v1276_v16 = vpop.f32.mrb[15].mxu1 }
 0x117   : > { %v830_v17 = vadd.f32 %v1274_v11, %v1210_v7  ;;  %v1277_v18 = vadd.f32 %v1276_v16, %v1275_v12 }
 0x119   : > { %875 = vst.msk [vmem:[%s1574_s18 + $0x30] sm:$0xff] %vm868_vm0, %v830_v17  ;;  %v896_v19 = vsel %vm868_vm0, %v830_v17, 0.0  ;;  %v928_v20 = vmul.f32 %v830_v17, %v830_v17  ;;  %v833_v21 = vadd.f32 %v1277_v18, %v1213_v15 }
 0x11a   : > { %v897_v22 = vadd.f32 %v896_v19, %v895_v6  ;;  %v1214_v23 = vpop.f32.mrb[16].mxu0 }
 0x11b   : > { %v949_v24 = vsel %vm868_vm0, %v928_v20, 0.0  ;;  %876 = vst.msk [vmem:[%s1574_s18 + $0x38] sm:$0xff] %vm868_vm0, %v833_v21  ;;  %v898_v25 = vsel %vm868_vm0, %v833_v21, 0.0  ;;  %v929_v26 = vmul.f32 %v833_v21, %v833_v21  ;;  %v1278_v27 = vpop.f32.mrb[16].mxu1  ;;  %v1215_v28 = vpop.f32.mrb[17].mxu0 }
 0x11c   : > { %v950_v29 = vadd.f32 %v949_v24, %v948_v14  ;;  %v899_v30 = vadd.f32 %v898_v25, %v897_v22  ;;  %v1216_v31 = vadd.f32 %v1215_v28, %v1214_v23  ;;  %v1279_v32 = vpop.f32.mrb[17].mxu1  ;;  %v1217_v33 = vpop.f32.mrb[18].mxu0 }
 0x11d   : > { %v951_v34 = vsel %vm868_vm0, %v929_v26, 0.0  ;;  %v1280_v35 = vadd.f32 %v1279_v32, %v1278_v27  ;;  %v1281_v36 = vpop.f32.mrb[18].mxu1  ;;  %v1218_v37 = vpop.f32.mrb[19].mxu0 }
 0x11e   : > { %v952_v38 = vadd.f32 %v951_v34, %v950_v29  ;;  %v1219_v39 = vadd.f32 %v1218_v37, %v1217_v33  ;;  %v1282_v40 = vpop.f32.mrb[19].mxu1 }
 0x11f   : > { %v838_v41 = vadd.f32 %v1280_v35, %v1216_v31  ;;  %v1283_v42 = vadd.f32 %v1282_v40, %v1281_v36 }
 0x121   : > { %877 = vst.msk [vmem:[%s1574_s18 + $0x40] sm:$0xff] %vm868_vm0, %v838_v41  ;;  %v900_v43 = vsel %vm868_vm0, %v838_v41, 0.0  ;;  %v930_v44 = vmul.f32 %v838_v41, %v838_v41  ;;  %v841_v45 = vadd.f32 %v1283_v42, %v1219_v39 }
 0x122   : > { %v901_v46 = vadd.f32 %v900_v43, %v899_v30  ;;  %v1220_v47 = vpop.f32.mrb[20].mxu0 }
 0x123   : > { %v953_v48 = vsel %vm868_vm0, %v930_v44, 0.0  ;;  %878 = vst.msk [vmem:[%s1574_s18 + $0x48] sm:$0xff] %vm868_vm0, %v841_v45  ;;  %v902_v49 = vsel %vm868_vm0, %v841_v45, 0.0  ;;  %v931_v50 = vmul.f32 %v841_v45, %v841_v45  ;;  %v1284_v51 = vpop.f32.mrb[20].mxu1  ;;  %v1221_v52 = vpop.f32.mrb[21].mxu0 }
 0x124   : > { %v954_v53 = vadd.f32 %v953_v48, %v952_v38  ;;  %v903_v54 = vadd.f32 %v902_v49, %v901_v46  ;;  %v1222_v55 = vadd.f32 %v1221_v52, %v1220_v47  ;;  %v1285_v56 = vpop.f32.mrb[21].mxu1  ;;  %v1223_v57 = vpop.f32.mrb[22].mxu0 }
 0x125   : > { %v955_v58 = vsel %vm868_vm0, %v931_v50, 0.0  ;;  %v1286_v59 = vadd.f32 %v1285_v56, %v1284_v51  ;;  %v1287_v60 = vpop.f32.mrb[22].mxu1  ;;  %v1224_v61 = vpop.f32.mrb[23].mxu0 }
 0x126   : > { %v956_v62 = vadd.f32 %v955_v58, %v954_v53  ;;  %v1225_v63 = vadd.f32 %v1224_v61, %v1223_v57  ;;  %v1288_v0 = vpop.f32.mrb[23].mxu1 }
 0x127   : > { %v846_v1 = vadd.f32 %v1286_v59, %v1222_v55  ;;  %v1289_v2 = vadd.f32 %v1288_v0, %v1287_v60 }
 0x129   : > { %879 = vst.msk [vmem:[%s1574_s18 + $0x50] sm:$0xff] %vm868_vm0, %v846_v1  ;;  %v904_v3 = vsel %vm868_vm0, %v846_v1, 0.0  ;;  %v932_v4 = vmul.f32 %v846_v1, %v846_v1  ;;  %v849_v5 = vadd.f32 %v1289_v2, %v1225_v63 }
 0x12a   : > { %v905_v6 = vadd.f32 %v904_v3, %v903_v54  ;;  %v1226_v7 = vpop.f32.mrb[24].mxu0 }
 0x12b   : > { %v957_v8 = vsel %vm868_vm0, %v932_v4, 0.0  ;;  %880 = vst.msk [vmem:[%s1574_s18 + $0x58] sm:$0xff] %vm868_vm0, %v849_v5  ;;  %v906_v9 = vsel %vm868_vm0, %v849_v5, 0.0  ;;  %v933_v10 = vmul.f32 %v849_v5, %v849_v5  ;;  %v1290_v11 = vpop.f32.mrb[24].mxu1  ;;  %v1227_v12 = vpop.f32.mrb[25].mxu0 }
 0x12c   : > { %v958_v13 = vadd.f32 %v957_v8, %v956_v62  ;;  %v907_v14 = vadd.f32 %v906_v9, %v905_v6  ;;  %v1228_v15 = vadd.f32 %v1227_v12, %v1226_v7  ;;  %v1291_v16 = vpop.f32.mrb[25].mxu1  ;;  %v1229_v17 = vpop.f32.mrb[26].mxu0 }
 0x12d   : > { %v959_v18 = vsel %vm868_vm0, %v933_v10, 0.0  ;;  %v1292_v19 = vadd.f32 %v1291_v16, %v1290_v11  ;;  %v1293_v20 = vpop.f32.mrb[26].mxu1  ;;  %v1230_v21 = vpop.f32.mrb[27].mxu0 }
 0x12e   : > { %v960_v22 = vadd.f32 %v959_v18, %v958_v13  ;;  %v1231_v23 = vadd.f32 %v1230_v21, %v1229_v17  ;;  %v1294_v24 = vpop.f32.mrb[27].mxu1 }
 0x12f   : > { %v854_v25 = vadd.f32 %v1292_v19, %v1228_v15  ;;  %v1295_v26 = vadd.f32 %v1294_v24, %v1293_v20 }
 0x131   : > { %881 = vst.msk [vmem:[%s1574_s18 + $0x60] sm:$0xff] %vm868_vm0, %v854_v25  ;;  %v908_v27 = vsel %vm868_vm0, %v854_v25, 0.0  ;;  %v934_v28 = vmul.f32 %v854_v25, %v854_v25  ;;  %v857_v29 = vadd.f32 %v1295_v26, %v1231_v23 }
 0x132   : > { %v909_v30 = vadd.f32 %v908_v27, %v907_v14  ;;  %v1232_v31 = vpop.f32.mrb[28].mxu0 }
 0x133   : > { %v961_v32 = vsel %vm868_vm0, %v934_v28, 0.0  ;;  %882 = vst.msk [vmem:[%s1574_s18 + $0x68] sm:$0xff] %vm868_vm0, %v857_v29  ;;  %v910_v33 = vsel %vm868_vm0, %v857_v29, 0.0  ;;  %v935_v34 = vmul.f32 %v857_v29, %v857_v29  ;;  %v1296_v35 = vpop.f32.mrb[28].mxu1  ;;  %v1233_v36 = vpop.f32.mrb[29].mxu0 }
 0x134   : > { %v962_v37 = vadd.f32 %v961_v32, %v960_v22  ;;  %v911_v38 = vadd.f32 %v910_v33, %v909_v30  ;;  %v1234_v39 = vadd.f32 %v1233_v36, %v1232_v31  ;;  %v1297_v40 = vpop.f32.mrb[29].mxu1  ;;  %v1235_v41 = vpop.f32.mrb[30].mxu0 }
 0x135   : > { %v963_v42 = vsel %vm868_vm0, %v935_v34, 0.0  ;;  %v1298_v43 = vadd.f32 %v1297_v40, %v1296_v35  ;;  %v1299_v44 = vpop.f32.mrb[30].mxu1  ;;  %v1236_v45 = vpop.f32.mrb[31].mxu0 }
 0x136   : > { %v964_v46 = vadd.f32 %v963_v42, %v962_v37  ;;  %v1237_v47 = vadd.f32 %v1236_v45, %v1235_v41  ;;  %v1300_v48 = vpop.f32.mrb[31].mxu1 }
 0x137   : > { %v862_v49 = vadd.f32 %v1298_v43, %v1234_v39  ;;  %v1301_v50 = vadd.f32 %v1300_v48, %v1299_v44 }
 0x139   : > { %883 = vst.msk [vmem:[%s1574_s18 + $0x70] sm:$0xff] %vm868_vm0, %v862_v49  ;;  %v912_v51 = vsel %vm868_vm0, %v862_v49, 0.0  ;;  %v936_v52 = vmul.f32 %v862_v49, %v862_v49  ;;  %v865_v53 = vadd.f32 %v1301_v50, %v1237_v47 }
 0x13a   : > { %v913_v54 = vadd.f32 %v912_v51, %v911_v38 }
 0x13b   : > { %v965_v55 = vsel %vm868_vm0, %v936_v52, 0.0  ;;  %884 = vst.msk [vmem:[%s1574_s18 + $0x78] sm:$0xff] %vm868_vm0, %v865_v53  ;;  %v914_v56 = vsel %vm868_vm0, %v865_v53, 0.0  ;;  %v937_v57 = vmul.f32 %v865_v53, %v865_v53 }
 0x13c   : > { %v966_v58 = vadd.f32 %v965_v55, %v964_v46  ;;  %v915_v59 = vadd.f32 %v914_v56, %v913_v54 }
 0x13d   : > { %v967_v60 = vsel %vm868_vm0, %v937_v57, 0.0 }
 0x13e   : > { %v916_v61 = vrot.slane %v915_v59, 4  ;;  %v968_v62 = vadd.f32 %v967_v60, %v966_v58 }
 0x140   : > { %v917_v63 = vadd.f32 %v916_v61, %v915_v59  ;;  %v969_v0 = vrot.slane %v968_v62, 4 }
 0x142   : > { %v918_v1 = vrot.slane %v917_v63, 2  ;;  %v970_v2 = vadd.f32 %v969_v0, %v968_v62 }
 0x144   : > { %v919_v3 = vadd.f32 %v918_v1, %v917_v63  ;;  %v971_v4 = vrot.slane %v970_v2, 2 }
 0x146   : > { %v920_v5 = vrot.slane %v919_v3, 1  ;;  %v972_v6 = vadd.f32 %v971_v4, %v970_v2 }
 0x148   : > { %v921_v7 = vadd.f32 %v920_v5, %v919_v3  ;;  %v973_v8 = vrot.slane %v972_v6, 1 }
 0x14a   : > { %v974_v9 = vadd.f32 %v973_v8, %v972_v6  ;;  %975 = vst.msk [vmem:[%s220_s21] sm:$0xff] %vm868_vm0, %v921_v7 }
 0x14c   : > { %976 = vst.msk [vmem:[%s224_s24] sm:$0xff] %vm868_vm0, %v974_v9 }
 0x14d PF: > { %s15_s15 = sadd.s32 1, %s1396_s15  }
 0x14e   : > { %p12_p5 = scmp.ge.s32.totalorder %s15_s15, 5  }
 0x150   :  { %14 = sbr.rel (!%p12_p5) target bundleno = 1 (0x1), region = 82 }

</bundles_post_ra>
